<compile_context>
chip_gen: v5e
topology: v5e:2x2
jax: 0.10.0
libtpu: 0.0.40
codegen_flags: <defaults>
</compile_context>

<pallas_src>
import jax
import jax.numpy as jnp
from jax.experimental import pallas as pl
from jax.experimental.pallas import tpu as pltpu


# ----------------------------------------------------------------------------
# Pallas kernel: one full LaSO block (per pair of the stacked group).
# ----------------------------------------------------------------------------
def _laso_kernel(x_ref, w1_ref, t1_ref, w2_ref, t2_ref, w3_ref, b3_ref,
                 out_ref):
    # l1: Linear(2*latent -> inner) on the pre-concatenated input (bf16 MXU,
    # f32 accumulate).  Eval-BN + bias are folded into w1/t1.
    x = x_ref[...]
    h = jnp.dot(x, w1_ref[...], preferred_element_type=jnp.float32) + t1_ref[...]
    # LeakyReLU(0.2); Dropout == identity at inference.
    h = jnp.where(h >= 0.0, h, 0.2 * h)

    # Linear(inner -> inner); eval-BN + bias folded into w2/t2.
    h = jnp.dot(h.astype(jnp.bfloat16), w2_ref[...],
                preferred_element_type=jnp.float32) + t2_ref[...]
    h = jnp.where(h >= 0.0, h, 0.2 * h)

    # Linear(inner -> latent) + Tanh.
    h = jnp.dot(h.astype(jnp.bfloat16), w3_ref[...],
                preferred_element_type=jnp.float32) + b3_ref[...]
    out_ref[...] = jnp.tanh(h)


def _vmem_limit_bytes(bsz, two_l, inner, latent):
    """Footprint-based scoped-VMEM limit (capped at v7x physical VMEM)."""
    weight_bytes = 2 * (two_l * inner + inner * inner + inner * latent)  # bf16, resident
    bias_bytes = 4 * 8 * (2 * inner + latent)          # (1,N) f32 rows pad to 8 sublanes
    io_bytes = 2 * bsz * (2 * two_l + 4 * latent)      # double-buffered x(bf16) + out(f32)
    scratch_bytes = 4 * bsz * (two_l + 2 * inner + 2 * latent)  # f32 intermediates
    total = weight_bytes + bias_bytes + io_bytes + scratch_bytes + (4 << 20)
    return int(min(max(total, 32 << 20), 64 << 20))


def laso_group(params, pairs):
    """Run one LaSOModule on several independent (x, y) pairs in ONE pallas_call.

    pairs: list of (x, y) arrays, each (batch, latent).  Returns one output
    per pair.  Weights stay resident in VMEM across the pair grid.
    """
    num_pairs = len(pairs)
    bsz = pairs[0][0].shape[0]
    two_l, inner = params["w1"].shape
    latent = params["w3"].shape[1]

    # Pre-concatenate each pair (layer-1 input) and stack along the pair axis.
    x = jnp.stack(
        [jnp.concatenate([p.astype(jnp.bfloat16), q.astype(jnp.bfloat16)],
                         axis=-1) for (p, q) in pairs],
        axis=0)  # (P, bsz, 2*latent), bf16

    vmem_full = pl.BlockSpec(memory_space=pltpu.MemorySpace.VMEM)  # resident, unblocked

    out = pl.pallas_call(
        _laso_kernel,
        out_shape=jax.ShapeDtypeStruct((num_pairs, bsz, latent), jnp.float32),
        grid=(num_pairs,),
        in_specs=[
            # Per-pair activations: pipelined over the grid, pair axis squeezed.
            pl.BlockSpec((None, bsz, two_l), lambda p: (p, 0, 0)),
            vmem_full,  # w1  (2*latent, inner)  bf16
            vmem_full,  # t1  (1, inner)         f32   (folded bias + BN shift)
            vmem_full,  # w2  (inner, inner)     bf16
            vmem_full,  # t2  (1, inner)         f32
            vmem_full,  # w3  (inner, latent)    bf16
            vmem_full,  # b3  (1, latent)        f32
        ],
        out_specs=pl.BlockSpec((None, bsz, latent), lambda p: (p, 0, 0)),
        compiler_params=pltpu.CompilerParams(
            dimension_semantics=("parallel",),
            vmem_limit_bytes=_vmem_limit_bytes(bsz, two_l, inner, latent),
        ),
    )(x, params["w1"], params["t1"], params["w2"], params["t2"],
      params["w3"], params["b3"])

    return tuple(out[i] for i in range(num_pairs))


# ----------------------------------------------------------------------------
# Deterministic parameter construction (synthetic, no checkpoint) with the
# eval-mode BatchNorm and Linear biases folded into the weights.
# ----------------------------------------------------------------------------
def make_laso_params(key, inner_dim, latent_dim, eps=1e-5):
    ks = jax.random.split(key, 9)
    scale = 0.05

    w1 = scale * jax.random.normal(ks[0], (2 * latent_dim, inner_dim), jnp.float32)
    b1 = scale * jax.random.normal(ks[1], (1, inner_dim), jnp.float32)
    g1 = 1.0 + 0.1 * jax.random.normal(ks[2], (1, inner_dim), jnp.float32)
    be1 = 0.1 * jax.random.normal(ks[3], (1, inner_dim), jnp.float32)

    w2 = scale * jax.random.normal(ks[4], (inner_dim, inner_dim), jnp.float32)
    b2 = scale * jax.random.normal(ks[5], (1, inner_dim), jnp.float32)
    g2 = 1.0 + 0.1 * jax.random.normal(ks[6], (1, inner_dim), jnp.float32)
    be2 = 0.1 * jax.random.normal(ks[7], (1, inner_dim), jnp.float32)

    w3 = scale * jax.random.normal(ks[8], (inner_dim, latent_dim), jnp.float32)
    b3 = jnp.zeros((1, latent_dim), jnp.float32)

    # Eval-mode BatchNorm1d (running_mean=0, running_var=1):
    #   y = gamma * (x - 0) / sqrt(1 + eps) + beta  ==  x * s + beta
    inv_std = 1.0 / jnp.sqrt(1.0 + eps)
    s1 = g1 * inv_std
    s2 = g2 * inv_std

    # Fold BN + Linear bias into the weights:  (x@W + b)*s + t == x@(W*s) + (b*s + t)
    return {
        "w1": (w1 * s1).astype(jnp.bfloat16),
        "t1": b1 * s1 + be1,
        "w2": (w2 * s2).astype(jnp.bfloat16),
        "t2": b2 * s2 + be2,
        "w3": w3.astype(jnp.bfloat16),
        "b3": b3,
    }


# ----------------------------------------------------------------------------
# SetOpsModule forward: 18 LaSO applications grouped into 6 pallas_calls.
# ----------------------------------------------------------------------------
@jax.jit
def set_ops_forward(sub_p, int_p, uni_p, a, b):
    a = a.reshape(a.shape[0], -1)
    b = b.reshape(b.shape[0], -1)

    # --- Level 1: only depends on (a, b). ---
    a_S_b, b_S_a = laso_group(sub_p, [(a, b), (b, a)])
    a_I_b, b_I_a = laso_group(int_p, [(a, b), (b, a)])
    a_U_b, b_U_a = laso_group(uni_p, [(a, b), (b, a)])

    # --- Level 2: depends on level-1 outputs. ---
    (a_S_b_b, b_S_a_a, a_S_b_I_a, b_S_a_I_b, a_S_a_I_b, b_S_b_I_a) = laso_group(
        sub_p,
        [(a_S_b, b), (b_S_a, a), (a, b_I_a), (b, a_I_b), (a, a_I_b), (b, b_I_a)])
    a_I_b_b, b_I_a_a = laso_group(int_p, [(a_I_b, b), (b_I_a, a)])

    # --- Level 2 + level 3 unions merged (all union-op, inputs now ready). ---
    a_U_b_b, b_U_a_a, out_a, out_b = laso_group(
        uni_p,
        [(a_U_b, b), (b_U_a, a), (a_S_b_I_a, a_I_b), (b_S_a_I_b, b_I_a)])

    return (out_a, out_b, a_S_b, b_S_a, a_U_b, b_U_a, a_I_b, b_I_a,
            a_S_b_b, b_S_a_a, a_I_b_b, b_I_a_a, a_U_b_b, b_U_a_a,
            a_S_b_I_a, b_S_a_I_b, a_S_a_I_b, b_S_b_I_a)


# ----------------------------------------------------------------------------
# Pure-JAX reference (same numerics: bf16 weights/activations, f32 accumulate)
# ----------------------------------------------------------------------------
def _laso_ref(params, a, b):
    x = jnp.concatenate([a.astype(jnp.bfloat16), b.astype(jnp.bfloat16)], axis=-1)
    h = jnp.dot(x, params["w1"], preferred_element_type=jnp.float32) + params["t1"]
    h = jnp.where(h >= 0.0, h, 0.2 * h)
    h = jnp.dot(h.astype(jnp.bfloat16), params["w2"],
                preferred_element_type=jnp.float32) + params["t2"]
    h = jnp.where(h >= 0.0, h, 0.2 * h)
    h = jnp.dot(h.astype(jnp.bfloat16), params["w3"],
                preferred_element_type=jnp.float32) + params["b3"]
    return jnp.tanh(h)


def set_ops_forward_ref(sub_p, int_p, uni_p, a, b):
    a = a.reshape(a.shape[0], -1)
    b = b.reshape(b.shape[0], -1)
    S = lambda x, y: _laso_ref(sub_p, x, y)
    I = lambda x, y: _laso_ref(int_p, x, y)
    U = lambda x, y: _laso_ref(uni_p, x, y)

    a_S_b = S(a, b); b_S_a = S(b, a)
    a_S_b_b = S(a_S_b, b); b_S_a_a = S(b_S_a, a)
    a_I_b = I(a, b); b_I_a = I(b, a)
    a_S_b_I_a = S(a, b_I_a); b_S_a_I_b = S(b, a_I_b)
    a_S_a_I_b = S(a, a_I_b); b_S_b_I_a = S(b, b_I_a)
    a_I_b_b = I(a_I_b, b); b_I_a_a = I(b_I_a, a)
    a_U_b = U(a, b); b_U_a = U(b, a)
    a_U_b_b = U(a_U_b, b); b_U_a_a = U(b_U_a, a)
    out_a = U(a_S_b_I_a, a_I_b); out_b = U(b_S_a_I_b, b_I_a)
    return (out_a, out_b, a_S_b, b_S_a, a_U_b, b_U_a, a_I_b, b_I_a,
            a_S_b_b, b_S_a_a, a_I_b_b, b_I_a_a, a_U_b_b, b_U_a_a,
            a_S_b_I_a, b_S_a_I_b, a_S_a_I_b, b_S_b_I_a)


if __name__ == "__main__":
    # Small shapes consistent with the module (defaults are 2048/2048):
    # latent_dim = input_dim = inner_dim = 128, batch = 8.
    batch = 8
    inner_dim = 128      # "input_dim" in SetOpsModule terms
    latent_dim = 128     # S/I/U latent dims (all equal)

    key = jax.random.PRNGKey(0)
    k_sub, k_int, k_uni, k_a, k_b = jax.random.split(key, 5)

    sub_params = make_laso_params(k_sub, inner_dim, latent_dim)
    int_params = make_laso_params(k_int, inner_dim, latent_dim)
    uni_params = make_laso_params(k_uni, inner_dim, latent_dim)

    a = jax.random.normal(k_a, (batch, latent_dim), jnp.float32)
    b = jax.random.normal(k_b, (batch, latent_dim), jnp.float32)

    outs = jax.block_until_ready(
        set_ops_forward(sub_params, int_params, uni_params, a, b))
    refs = jax.block_until_ready(
        set_ops_forward_ref(sub_params, int_params, uni_params, a, b))

    assert len(outs) == 18
    for o, r in zip(outs, refs):
        assert o.shape == (batch, latent_dim)
        assert o.dtype == jnp.float32
        assert bool(jnp.all(jnp.isfinite(o)))
        # Tanh output range sanity check (allow exact saturation at +/-1).
        assert bool(jnp.all(jnp.abs(o) <= 1.0 + 1e-6))
        # Match the pure-JAX reference with identical bf16/f32 numerics.
        assert bool(jnp.allclose(o, r, atol=1e-2, rtol=0.0))

    print("KERNEL_OK")
</pallas_src>

<mosaic_0001>
module attributes {stable_mosaic.version = 11 : i64} {
  func.func @_laso_kernel(%arg0: i32, %arg1: memref<1x8x256xbf16, #tpu.memory_space<vmem>>, %arg2: memref<256x128xbf16, #tpu.memory_space<vmem>>, %arg3: memref<1x128xf32, #tpu.memory_space<vmem>>, %arg4: memref<128x128xbf16, #tpu.memory_space<vmem>>, %arg5: memref<1x128xf32, #tpu.memory_space<vmem>>, %arg6: memref<128x128xbf16, #tpu.memory_space<vmem>>, %arg7: memref<1x128xf32, #tpu.memory_space<vmem>>, %arg8: memref<1x8x128xf32, #tpu.memory_space<vmem>>) attributes {dimension_semantics = [#tpu.dimension_semantics<parallel>], iteration_bounds = array<i64: 2>, scalar_prefetch = 0 : i64, scratch_operands = 0 : i64, tpu.core_type = #tpu.core_type<tc>, window_params = [{transform_indices = @transform_0, window_bounds = array<i64: 1, 8, 256>}, {pipeline_mode = #tpu.pipeline_mode<synchronous>, transform_indices = @transform_1, window_bounds = array<i64: 256, 128>}, {pipeline_mode = #tpu.pipeline_mode<synchronous>, transform_indices = @transform_2, window_bounds = array<i64: 1, 128>}, {pipeline_mode = #tpu.pipeline_mode<synchronous>, transform_indices = @transform_3, window_bounds = array<i64: 128, 128>}, {pipeline_mode = #tpu.pipeline_mode<synchronous>, transform_indices = @transform_4, window_bounds = array<i64: 1, 128>}, {pipeline_mode = #tpu.pipeline_mode<synchronous>, transform_indices = @transform_5, window_bounds = array<i64: 128, 128>}, {pipeline_mode = #tpu.pipeline_mode<synchronous>, transform_indices = @transform_6, window_bounds = array<i64: 1, 128>}, {transform_indices = @transform_7, window_bounds = array<i64: 1, 8, 128>}]} {
    %c0 = arith.constant 0 : index
    %c0_0 = arith.constant 0 : index
    %c0_1 = arith.constant 0 : index
    %0 = vector.load %arg1[%c0, %c0_0, %c0_1] : memref<1x8x256xbf16, #tpu.memory_space<vmem>>, vector<1x8x256xbf16>
    %1 = vector.shape_cast %0 : vector<1x8x256xbf16> to vector<8x256xbf16>
    %c0_2 = arith.constant 0 : index
    %c0_3 = arith.constant 0 : index
    %2 = vector.load %arg2[%c0_2, %c0_3] : memref<256x128xbf16, #tpu.memory_space<vmem>>, vector<256x128xbf16>
    %cst = arith.constant dense<0.000000e+00> : vector<8x128xf32>
    %3 = tpu.matmul %1, %2, %cst {dimension_numbers = #tpu.dot_dimension_numbers<[1], [0], [0], [1], [0, 0, 1, 1], [], []>} : vector<8x256xbf16>, vector<256x128xbf16>, vector<8x128xf32> -> vector<8x128xf32>
    %c0_4 = arith.constant 0 : index
    %c0_5 = arith.constant 0 : index
    %4 = vector.load %arg3[%c0_4, %c0_5] : memref<1x128xf32, #tpu.memory_space<vmem>>, vector<1x128xf32>
    %5 = vector.broadcast %4 : vector<1x128xf32> to vector<8x128xf32>
    %6 = arith.addf %3, %5 : vector<8x128xf32>
    %cst_6 = arith.constant 0.000000e+00 : f32
    %7 = vector.broadcast %cst_6 : f32 to vector<8x128xf32>
    %8 = arith.cmpf oge, %6, %7 : vector<8x128xf32>
    %cst_7 = arith.constant 2.000000e-01 : f32
    %9 = vector.broadcast %cst_7 : f32 to vector<8x128xf32>
    %10 = arith.mulf %9, %6 : vector<8x128xf32>
    %11 = arith.select %8, %6, %10 : vector<8x128xi1>, vector<8x128xf32>
    %12 = arith.truncf %11 : vector<8x128xf32> to vector<8x128xbf16>
    %c0_8 = arith.constant 0 : index
    %c0_9 = arith.constant 0 : index
    %13 = vector.load %arg4[%c0_8, %c0_9] : memref<128x128xbf16, #tpu.memory_space<vmem>>, vector<128x128xbf16>
    %cst_10 = arith.constant dense<0.000000e+00> : vector<8x128xf32>
    %14 = tpu.matmul %12, %13, %cst_10 {dimension_numbers = #tpu.dot_dimension_numbers<[1], [0], [0], [1], [0, 0, 1, 1], [], []>} : vector<8x128xbf16>, vector<128x128xbf16>, vector<8x128xf32> -> vector<8x128xf32>
    %c0_11 = arith.constant 0 : index
    %c0_12 = arith.constant 0 : index
    %15 = vector.load %arg5[%c0_11, %c0_12] : memref<1x128xf32, #tpu.memory_space<vmem>>, vector<1x128xf32>
    %16 = vector.broadcast %15 : vector<1x128xf32> to vector<8x128xf32>
    %17 = arith.addf %14, %16 : vector<8x128xf32>
    %cst_13 = arith.constant 0.000000e+00 : f32
    %18 = vector.broadcast %cst_13 : f32 to vector<8x128xf32>
    %19 = arith.cmpf oge, %17, %18 : vector<8x128xf32>
    %cst_14 = arith.constant 2.000000e-01 : f32
    %20 = vector.broadcast %cst_14 : f32 to vector<8x128xf32>
    %21 = arith.mulf %20, %17 : vector<8x128xf32>
    %22 = arith.select %19, %17, %21 : vector<8x128xi1>, vector<8x128xf32>
    %23 = arith.truncf %22 : vector<8x128xf32> to vector<8x128xbf16>
    %c0_15 = arith.constant 0 : index
    %c0_16 = arith.constant 0 : index
    %24 = vector.load %arg6[%c0_15, %c0_16] : memref<128x128xbf16, #tpu.memory_space<vmem>>, vector<128x128xbf16>
    %cst_17 = arith.constant dense<0.000000e+00> : vector<8x128xf32>
    %25 = tpu.matmul %23, %24, %cst_17 {dimension_numbers = #tpu.dot_dimension_numbers<[1], [0], [0], [1], [0, 0, 1, 1], [], []>} : vector<8x128xbf16>, vector<128x128xbf16>, vector<8x128xf32> -> vector<8x128xf32>
    %c0_18 = arith.constant 0 : index
    %c0_19 = arith.constant 0 : index
    %26 = vector.load %arg7[%c0_18, %c0_19] : memref<1x128xf32, #tpu.memory_space<vmem>>, vector<1x128xf32>
    %27 = vector.broadcast %26 : vector<1x128xf32> to vector<8x128xf32>
    %28 = arith.addf %25, %27 : vector<8x128xf32>
    %29 = math.tanh %28 : vector<8x128xf32>
    %c0_20 = arith.constant 0 : index
    %c0_21 = arith.constant 0 : index
    %c0_22 = arith.constant 0 : index
    %30 = vector.load %arg8[%c0_20, %c0_21, %c0_22] : memref<1x8x128xf32, #tpu.memory_space<vmem>>, vector<1x8x128xf32>
    %31 = vector.shape_cast %30 : vector<1x8x128xf32> to vector<8x128xf32>
    %32 = vector.shape_cast %29 : vector<8x128xf32> to vector<1x8x128xf32>
    tpu.vector_store %arg8[%c0_20, %c0_21, %c0_22], %32 {strides = array<i32>} : memref<1x8x128xf32, #tpu.memory_space<vmem>>, vector<1x8x128xf32>,
    return
  }
  func.func @transform_0(%arg0: i32) -> (i32, i32, i32) {
    %c0_i32 = arith.constant 0 : i32
    %c0_i32_0 = arith.constant 0 : i32
    %c0_i32_1 = arith.constant 0 : i32
    return %arg0, %c0_i32, %c0_i32_0 : i32, i32, i32
  }
  func.func @transform_1(%arg0: i32) -> (i32, i32) {
    %c0_i32 = arith.constant 0 : i32
    %c0_i32_0 = arith.constant 0 : i32
    %c0_i32_1 = arith.constant 0 : i32
    return %c0_i32, %c0_i32_0 : i32, i32
  }
  func.func @transform_2(%arg0: i32) -> (i32, i32) {
    %c0_i32 = arith.constant 0 : i32
    %c0_i32_0 = arith.constant 0 : i32
    %c0_i32_1 = arith.constant 0 : i32
    return %c0_i32, %c0_i32_0 : i32, i32
  }
  func.func @transform_3(%arg0: i32) -> (i32, i32) {
    %c0_i32 = arith.constant 0 : i32
    %c0_i32_0 = arith.constant 0 : i32
    %c0_i32_1 = arith.constant 0 : i32
    return %c0_i32, %c0_i32_0 : i32, i32
  }
  func.func @transform_4(%arg0: i32) -> (i32, i32) {
    %c0_i32 = arith.constant 0 : i32
    %c0_i32_0 = arith.constant 0 : i32
    %c0_i32_1 = arith.constant 0 : i32
    return %c0_i32, %c0_i32_0 : i32, i32
  }
  func.func @transform_5(%arg0: i32) -> (i32, i32) {
    %c0_i32 = arith.constant 0 : i32
    %c0_i32_0 = arith.constant 0 : i32
    %c0_i32_1 = arith.constant 0 : i32
    return %c0_i32, %c0_i32_0 : i32, i32
  }
  func.func @transform_6(%arg0: i32) -> (i32, i32) {
    %c0_i32 = arith.constant 0 : i32
    %c0_i32_0 = arith.constant 0 : i32
    %c0_i32_1 = arith.constant 0 : i32
    return %c0_i32, %c0_i32_0 : i32, i32
  }
  func.func @transform_7(%arg0: i32) -> (i32, i32, i32) {
    %c0_i32 = arith.constant 0 : i32
    %c0_i32_0 = arith.constant 0 : i32
    %c0_i32_1 = arith.constant 0 : i32
    return %arg0, %c0_i32, %c0_i32_0 : i32, i32, i32
  }
}

module attributes {stable_mosaic.version = 11 : i64} {
  func.func @_laso_kernel(%arg0: i32, %arg1: memref<1x8x256xbf16, #tpu.memory_space<vmem>>, %arg2: memref<256x128xbf16, #tpu.memory_space<vmem>>, %arg3: memref<1x128xf32, #tpu.memory_space<vmem>>, %arg4: memref<128x128xbf16, #tpu.memory_space<vmem>>, %arg5: memref<1x128xf32, #tpu.memory_space<vmem>>, %arg6: memref<128x128xbf16, #tpu.memory_space<vmem>>, %arg7: memref<1x128xf32, #tpu.memory_space<vmem>>, %arg8: memref<1x8x128xf32, #tpu.memory_space<vmem>>) attributes {dimension_semantics = [#tpu.dimension_semantics<parallel>], iteration_bounds = array<i64: 2>, scalar_prefetch = 0 : i64, scratch_operands = 0 : i64, tpu.core_type = #tpu.core_type<tc>, window_params = [{transform_indices = @transform_0, window_bounds = array<i64: 1, 8, 256>}, {pipeline_mode = #tpu.pipeline_mode<synchronous>, transform_indices = @transform_1, window_bounds = array<i64: 256, 128>}, {pipeline_mode = #tpu.pipeline_mode<synchronous>, transform_indices = @transform_2, window_bounds = array<i64: 1, 128>}, {pipeline_mode = #tpu.pipeline_mode<synchronous>, transform_indices = @transform_3, window_bounds = array<i64: 128, 128>}, {pipeline_mode = #tpu.pipeline_mode<synchronous>, transform_indices = @transform_4, window_bounds = array<i64: 1, 128>}, {pipeline_mode = #tpu.pipeline_mode<synchronous>, transform_indices = @transform_5, window_bounds = array<i64: 128, 128>}, {pipeline_mode = #tpu.pipeline_mode<synchronous>, transform_indices = @transform_6, window_bounds = array<i64: 1, 128>}, {transform_indices = @transform_7, window_bounds = array<i64: 1, 8, 128>}]} {
    %c0 = arith.constant 0 : index
    %c0_0 = arith.constant 0 : index
    %c0_1 = arith.constant 0 : index
    %0 = vector.load %arg1[%c0, %c0_0, %c0_1] : memref<1x8x256xbf16, #tpu.memory_space<vmem>>, vector<1x8x256xbf16>
    %1 = vector.shape_cast %0 : vector<1x8x256xbf16> to vector<8x256xbf16>
    %c0_2 = arith.constant 0 : index
    %c0_3 = arith.constant 0 : index
    %2 = vector.load %arg2[%c0_2, %c0_3] : memref<256x128xbf16, #tpu.memory_space<vmem>>, vector<256x128xbf16>
    %cst = arith.constant dense<0.000000e+00> : vector<8x128xf32>
    %3 = tpu.matmul %1, %2, %cst {dimension_numbers = #tpu.dot_dimension_numbers<[1], [0], [0], [1], [0, 0, 1, 1], [], []>} : vector<8x256xbf16>, vector<256x128xbf16>, vector<8x128xf32> -> vector<8x128xf32>
    %c0_4 = arith.constant 0 : index
    %c0_5 = arith.constant 0 : index
    %4 = vector.load %arg3[%c0_4, %c0_5] : memref<1x128xf32, #tpu.memory_space<vmem>>, vector<1x128xf32>
    %5 = vector.broadcast %4 : vector<1x128xf32> to vector<8x128xf32>
    %6 = arith.addf %3, %5 : vector<8x128xf32>
    %cst_6 = arith.constant 0.000000e+00 : f32
    %7 = vector.broadcast %cst_6 : f32 to vector<8x128xf32>
    %8 = arith.cmpf oge, %6, %7 : vector<8x128xf32>
    %cst_7 = arith.constant 2.000000e-01 : f32
    %9 = vector.broadcast %cst_7 : f32 to vector<8x128xf32>
    %10 = arith.mulf %9, %6 : vector<8x128xf32>
    %11 = arith.select %8, %6, %10 : vector<8x128xi1>, vector<8x128xf32>
    %12 = arith.truncf %11 : vector<8x128xf32> to vector<8x128xbf16>
    %c0_8 = arith.constant 0 : index
    %c0_9 = arith.constant 0 : index
    %13 = vector.load %arg4[%c0_8, %c0_9] : memref<128x128xbf16, #tpu.memory_space<vmem>>, vector<128x128xbf16>
    %cst_10 = arith.constant dense<0.000000e+00> : vector<8x128xf32>
    %14 = tpu.matmul %12, %13, %cst_10 {dimension_numbers = #tpu.dot_dimension_numbers<[1], [0], [0], [1], [0, 0, 1, 1], [], []>} : vector<8x128xbf16>, vector<128x128xbf16>, vector<8x128xf32> -> vector<8x128xf32>
    %c0_11 = arith.constant 0 : index
    %c0_12 = arith.constant 0 : index
    %15 = vector.load %arg5[%c0_11, %c0_12] : memref<1x128xf32, #tpu.memory_space<vmem>>, vector<1x128xf32>
    %16 = vector.broadcast %15 : vector<1x128xf32> to vector<8x128xf32>
    %17 = arith.addf %14, %16 : vector<8x128xf32>
    %cst_13 = arith.constant 0.000000e+00 : f32
    %18 = vector.broadcast %cst_13 : f32 to vector<8x128xf32>
    %19 = arith.cmpf oge, %17, %18 : vector<8x128xf32>
    %cst_14 = arith.constant 2.000000e-01 : f32
    %20 = vector.broadcast %cst_14 : f32 to vector<8x128xf32>
    %21 = arith.mulf %20, %17 : vector<8x128xf32>
    %22 = arith.select %19, %17, %21 : vector<8x128xi1>, vector<8x128xf32>
    %23 = arith.truncf %22 : vector<8x128xf32> to vector<8x128xbf16>
    %c0_15 = arith.constant 0 : index
    %c0_16 = arith.constant 0 : index
    %24 = vector.load %arg6[%c0_15, %c0_16] : memref<128x128xbf16, #tpu.memory_space<vmem>>, vector<128x128xbf16>
    %cst_17 = arith.constant dense<0.000000e+00> : vector<8x128xf32>
    %25 = tpu.matmul %23, %24, %cst_17 {dimension_numbers = #tpu.dot_dimension_numbers<[1], [0], [0], [1], [0, 0, 1, 1], [], []>} : vector<8x128xbf16>, vector<128x128xbf16>, vector<8x128xf32> -> vector<8x128xf32>
    %c0_18 = arith.constant 0 : index
    %c0_19 = arith.constant 0 : index
    %26 = vector.load %arg7[%c0_18, %c0_19] : memref<1x128xf32, #tpu.memory_space<vmem>>, vector<1x128xf32>
    %27 = vector.broadcast %26 : vector<1x128xf32> to vector<8x128xf32>
    %28 = arith.addf %25, %27 : vector<8x128xf32>
    %29 = math.tanh %28 : vector<8x128xf32>
    %c0_20 = arith.constant 0 : index
    %c0_21 = arith.constant 0 : index
    %c0_22 = arith.constant 0 : index
    %30 = vector.load %arg8[%c0_20, %c0_21, %c0_22] : memref<1x8x128xf32, #tpu.memory_space<vmem>>, vector<1x8x128xf32>
    %31 = vector.shape_cast %30 : vector<1x8x128xf32> to vector<8x128xf32>
    %32 = vector.shape_cast %29 : vector<8x128xf32> to vector<1x8x128xf32>
    tpu.vector_store %arg8[%c0_20, %c0_21, %c0_22], %32 {strides = array<i32>} : memref<1x8x128xf32, #tpu.memory_space<vmem>>, vector<1x8x128xf32>,
    return
  }
  func.func @transform_0(%arg0: i32) -> (i32, i32, i32) {
    %c0_i32 = arith.constant 0 : i32
    %c0_i32_0 = arith.constant 0 : i32
    %c0_i32_1 = arith.constant 0 : i32
    return %arg0, %c0_i32, %c0_i32_0 : i32, i32, i32
  }
  func.func @transform_1(%arg0: i32) -> (i32, i32) {
    %c0_i32 = arith.constant 0 : i32
    %c0_i32_0 = arith.constant 0 : i32
    %c0_i32_1 = arith.constant 0 : i32
    return %c0_i32, %c0_i32_0 : i32, i32
  }
  func.func @transform_2(%arg0: i32) -> (i32, i32) {
    %c0_i32 = arith.constant 0 : i32
    %c0_i32_0 = arith.constant 0 : i32
    %c0_i32_1 = arith.constant 0 : i32
    return %c0_i32, %c0_i32_0 : i32, i32
  }
  func.func @transform_3(%arg0: i32) -> (i32, i32) {
    %c0_i32 = arith.constant 0 : i32
    %c0_i32_0 = arith.constant 0 : i32
    %c0_i32_1 = arith.constant 0 : i32
    return %c0_i32, %c0_i32_0 : i32, i32
  }
  func.func @transform_4(%arg0: i32) -> (i32, i32) {
    %c0_i32 = arith.constant 0 : i32
    %c0_i32_0 = arith.constant 0 : i32
    %c0_i32_1 = arith.constant 0 : i32
    return %c0_i32, %c0_i32_0 : i32, i32
  }
  func.func @transform_5(%arg0: i32) -> (i32, i32) {
    %c0_i32 = arith.constant 0 : i32
    %c0_i32_0 = arith.constant 0 : i32
    %c0_i32_1 = arith.constant 0 : i32
    return %c0_i32, %c0_i32_0 : i32, i32
  }
  func.func @transform_6(%arg0: i32) -> (i32, i32) {
    %c0_i32 = arith.constant 0 : i32
    %c0_i32_0 = arith.constant 0 : i32
    %c0_i32_1 = arith.constant 0 : i32
    return %c0_i32, %c0_i32_0 : i32, i32
  }
  func.func @transform_7(%arg0: i32) -> (i32, i32, i32) {
    %c0_i32 = arith.constant 0 : i32
    %c0_i32_0 = arith.constant 0 : i32
    %c0_i32_1 = arith.constant 0 : i32
    return %arg0, %c0_i32, %c0_i32_0 : i32, i32, i32
  }
}

module attributes {stable_mosaic.version = 11 : i64} {
  func.func @_laso_kernel(%arg0: i32, %arg1: memref<1x8x256xbf16, #tpu.memory_space<vmem>>, %arg2: memref<256x128xbf16, #tpu.memory_space<vmem>>, %arg3: memref<1x128xf32, #tpu.memory_space<vmem>>, %arg4: memref<128x128xbf16, #tpu.memory_space<vmem>>, %arg5: memref<1x128xf32, #tpu.memory_space<vmem>>, %arg6: memref<128x128xbf16, #tpu.memory_space<vmem>>, %arg7: memref<1x128xf32, #tpu.memory_space<vmem>>, %arg8: memref<1x8x128xf32, #tpu.memory_space<vmem>>) attributes {dimension_semantics = [#tpu.dimension_semantics<parallel>], iteration_bounds = array<i64: 6>, scalar_prefetch = 0 : i64, scratch_operands = 0 : i64, tpu.core_type = #tpu.core_type<tc>, window_params = [{transform_indices = @transform_0, window_bounds = array<i64: 1, 8, 256>}, {pipeline_mode = #tpu.pipeline_mode<synchronous>, transform_indices = @transform_1, window_bounds = array<i64: 256, 128>}, {pipeline_mode = #tpu.pipeline_mode<synchronous>, transform_indices = @transform_2, window_bounds = array<i64: 1, 128>}, {pipeline_mode = #tpu.pipeline_mode<synchronous>, transform_indices = @transform_3, window_bounds = array<i64: 128, 128>}, {pipeline_mode = #tpu.pipeline_mode<synchronous>, transform_indices = @transform_4, window_bounds = array<i64: 1, 128>}, {pipeline_mode = #tpu.pipeline_mode<synchronous>, transform_indices = @transform_5, window_bounds = array<i64: 128, 128>}, {pipeline_mode = #tpu.pipeline_mode<synchronous>, transform_indices = @transform_6, window_bounds = array<i64: 1, 128>}, {transform_indices = @transform_7, window_bounds = array<i64: 1, 8, 128>}]} {
    %c0 = arith.constant 0 : index
    %c0_0 = arith.constant 0 : index
    %c0_1 = arith.constant 0 : index
    %0 = vector.load %arg1[%c0, %c0_0, %c0_1] : memref<1x8x256xbf16, #tpu.memory_space<vmem>>, vector<1x8x256xbf16>
    %1 = vector.shape_cast %0 : vector<1x8x256xbf16> to vector<8x256xbf16>
    %c0_2 = arith.constant 0 : index
    %c0_3 = arith.constant 0 : index
    %2 = vector.load %arg2[%c0_2, %c0_3] : memref<256x128xbf16, #tpu.memory_space<vmem>>, vector<256x128xbf16>
    %cst = arith.constant dense<0.000000e+00> : vector<8x128xf32>
    %3 = tpu.matmul %1, %2, %cst {dimension_numbers = #tpu.dot_dimension_numbers<[1], [0], [0], [1], [0, 0, 1, 1], [], []>} : vector<8x256xbf16>, vector<256x128xbf16>, vector<8x128xf32> -> vector<8x128xf32>
    %c0_4 = arith.constant 0 : index
    %c0_5 = arith.constant 0 : index
    %4 = vector.load %arg3[%c0_4, %c0_5] : memref<1x128xf32, #tpu.memory_space<vmem>>, vector<1x128xf32>
    %5 = vector.broadcast %4 : vector<1x128xf32> to vector<8x128xf32>
    %6 = arith.addf %3, %5 : vector<8x128xf32>
    %cst_6 = arith.constant 0.000000e+00 : f32
    %7 = vector.broadcast %cst_6 : f32 to vector<8x128xf32>
    %8 = arith.cmpf oge, %6, %7 : vector<8x128xf32>
    %cst_7 = arith.constant 2.000000e-01 : f32
    %9 = vector.broadcast %cst_7 : f32 to vector<8x128xf32>
    %10 = arith.mulf %9, %6 : vector<8x128xf32>
    %11 = arith.select %8, %6, %10 : vector<8x128xi1>, vector<8x128xf32>
    %12 = arith.truncf %11 : vector<8x128xf32> to vector<8x128xbf16>
    %c0_8 = arith.constant 0 : index
    %c0_9 = arith.constant 0 : index
    %13 = vector.load %arg4[%c0_8, %c0_9] : memref<128x128xbf16, #tpu.memory_space<vmem>>, vector<128x128xbf16>
    %cst_10 = arith.constant dense<0.000000e+00> : vector<8x128xf32>
    %14 = tpu.matmul %12, %13, %cst_10 {dimension_numbers = #tpu.dot_dimension_numbers<[1], [0], [0], [1], [0, 0, 1, 1], [], []>} : vector<8x128xbf16>, vector<128x128xbf16>, vector<8x128xf32> -> vector<8x128xf32>
    %c0_11 = arith.constant 0 : index
    %c0_12 = arith.constant 0 : index
    %15 = vector.load %arg5[%c0_11, %c0_12] : memref<1x128xf32, #tpu.memory_space<vmem>>, vector<1x128xf32>
    %16 = vector.broadcast %15 : vector<1x128xf32> to vector<8x128xf32>
    %17 = arith.addf %14, %16 : vector<8x128xf32>
    %cst_13 = arith.constant 0.000000e+00 : f32
    %18 = vector.broadcast %cst_13 : f32 to vector<8x128xf32>
    %19 = arith.cmpf oge, %17, %18 : vector<8x128xf32>
    %cst_14 = arith.constant 2.000000e-01 : f32
    %20 = vector.broadcast %cst_14 : f32 to vector<8x128xf32>
    %21 = arith.mulf %20, %17 : vector<8x128xf32>
    %22 = arith.select %19, %17, %21 : vector<8x128xi1>, vector<8x128xf32>
    %23 = arith.truncf %22 : vector<8x128xf32> to vector<8x128xbf16>
    %c0_15 = arith.constant 0 : index
    %c0_16 = arith.constant 0 : index
    %24 = vector.load %arg6[%c0_15, %c0_16] : memref<128x128xbf16, #tpu.memory_space<vmem>>, vector<128x128xbf16>
    %cst_17 = arith.constant dense<0.000000e+00> : vector<8x128xf32>
    %25 = tpu.matmul %23, %24, %cst_17 {dimension_numbers = #tpu.dot_dimension_numbers<[1], [0], [0], [1], [0, 0, 1, 1], [], []>} : vector<8x128xbf16>, vector<128x128xbf16>, vector<8x128xf32> -> vector<8x128xf32>
    %c0_18 = arith.constant 0 : index
    %c0_19 = arith.constant 0 : index
    %26 = vector.load %arg7[%c0_18, %c0_19] : memref<1x128xf32, #tpu.memory_space<vmem>>, vector<1x128xf32>
    %27 = vector.broadcast %26 : vector<1x128xf32> to vector<8x128xf32>
    %28 = arith.addf %25, %27 : vector<8x128xf32>
    %29 = math.tanh %28 : vector<8x128xf32>
    %c0_20 = arith.constant 0 : index
    %c0_21 = arith.constant 0 : index
    %c0_22 = arith.constant 0 : index
    %30 = vector.load %arg8[%c0_20, %c0_21, %c0_22] : memref<1x8x128xf32, #tpu.memory_space<vmem>>, vector<1x8x128xf32>
    %31 = vector.shape_cast %30 : vector<1x8x128xf32> to vector<8x128xf32>
    %32 = vector.shape_cast %29 : vector<8x128xf32> to vector<1x8x128xf32>
    tpu.vector_store %arg8[%c0_20, %c0_21, %c0_22], %32 {strides = array<i32>} : memref<1x8x128xf32, #tpu.memory_space<vmem>>, vector<1x8x128xf32>,
    return
  }
  func.func @transform_0(%arg0: i32) -> (i32, i32, i32) {
    %c0_i32 = arith.constant 0 : i32
    %c0_i32_0 = arith.constant 0 : i32
    %c0_i32_1 = arith.constant 0 : i32
    return %arg0, %c0_i32, %c0_i32_0 : i32, i32, i32
  }
  func.func @transform_1(%arg0: i32) -> (i32, i32) {
    %c0_i32 = arith.constant 0 : i32
    %c0_i32_0 = arith.constant 0 : i32
    %c0_i32_1 = arith.constant 0 : i32
    return %c0_i32, %c0_i32_0 : i32, i32
  }
  func.func @transform_2(%arg0: i32) -> (i32, i32) {
    %c0_i32 = arith.constant 0 : i32
    %c0_i32_0 = arith.constant 0 : i32
    %c0_i32_1 = arith.constant 0 : i32
    return %c0_i32, %c0_i32_0 : i32, i32
  }
  func.func @transform_3(%arg0: i32) -> (i32, i32) {
    %c0_i32 = arith.constant 0 : i32
    %c0_i32_0 = arith.constant 0 : i32
    %c0_i32_1 = arith.constant 0 : i32
    return %c0_i32, %c0_i32_0 : i32, i32
  }
  func.func @transform_4(%arg0: i32) -> (i32, i32) {
    %c0_i32 = arith.constant 0 : i32
    %c0_i32_0 = arith.constant 0 : i32
    %c0_i32_1 = arith.constant 0 : i32
    return %c0_i32, %c0_i32_0 : i32, i32
  }
  func.func @transform_5(%arg0: i32) -> (i32, i32) {
    %c0_i32 = arith.constant 0 : i32
    %c0_i32_0 = arith.constant 0 : i32
    %c0_i32_1 = arith.constant 0 : i32
    return %c0_i32, %c0_i32_0 : i32, i32
  }
  func.func @transform_6(%arg0: i32) -> (i32, i32) {
    %c0_i32 = arith.constant 0 : i32
    %c0_i32_0 = arith.constant 0 : i32
    %c0_i32_1 = arith.constant 0 : i32
    return %c0_i32, %c0_i32_0 : i32, i32
  }
  func.func @transform_7(%arg0: i32) -> (i32, i32, i32) {
    %c0_i32 = arith.constant 0 : i32
    %c0_i32_0 = arith.constant 0 : i32
    %c0_i32_1 = arith.constant 0 : i32
    return %arg0, %c0_i32, %c0_i32_0 : i32, i32, i32
  }
}

module attributes {stable_mosaic.version = 11 : i64} {
  func.func @_laso_kernel(%arg0: i32, %arg1: memref<1x8x256xbf16, #tpu.memory_space<vmem>>, %arg2: memref<256x128xbf16, #tpu.memory_space<vmem>>, %arg3: memref<1x128xf32, #tpu.memory_space<vmem>>, %arg4: memref<128x128xbf16, #tpu.memory_space<vmem>>, %arg5: memref<1x128xf32, #tpu.memory_space<vmem>>, %arg6: memref<128x128xbf16, #tpu.memory_space<vmem>>, %arg7: memref<1x128xf32, #tpu.memory_space<vmem>>, %arg8: memref<1x8x128xf32, #tpu.memory_space<vmem>>) attributes {dimension_semantics = [#tpu.dimension_semantics<parallel>], iteration_bounds = array<i64: 2>, scalar_prefetch = 0 : i64, scratch_operands = 0 : i64, tpu.core_type = #tpu.core_type<tc>, window_params = [{transform_indices = @transform_0, window_bounds = array<i64: 1, 8, 256>}, {pipeline_mode = #tpu.pipeline_mode<synchronous>, transform_indices = @transform_1, window_bounds = array<i64: 256, 128>}, {pipeline_mode = #tpu.pipeline_mode<synchronous>, transform_indices = @transform_2, window_bounds = array<i64: 1, 128>}, {pipeline_mode = #tpu.pipeline_mode<synchronous>, transform_indices = @transform_3, window_bounds = array<i64: 128, 128>}, {pipeline_mode = #tpu.pipeline_mode<synchronous>, transform_indices = @transform_4, window_bounds = array<i64: 1, 128>}, {pipeline_mode = #tpu.pipeline_mode<synchronous>, transform_indices = @transform_5, window_bounds = array<i64: 128, 128>}, {pipeline_mode = #tpu.pipeline_mode<synchronous>, transform_indices = @transform_6, window_bounds = array<i64: 1, 128>}, {transform_indices = @transform_7, window_bounds = array<i64: 1, 8, 128>}]} {
    %c0 = arith.constant 0 : index
    %c0_0 = arith.constant 0 : index
    %c0_1 = arith.constant 0 : index
    %0 = vector.load %arg1[%c0, %c0_0, %c0_1] : memref<1x8x256xbf16, #tpu.memory_space<vmem>>, vector<1x8x256xbf16>
    %1 = vector.shape_cast %0 : vector<1x8x256xbf16> to vector<8x256xbf16>
    %c0_2 = arith.constant 0 : index
    %c0_3 = arith.constant 0 : index
    %2 = vector.load %arg2[%c0_2, %c0_3] : memref<256x128xbf16, #tpu.memory_space<vmem>>, vector<256x128xbf16>
    %cst = arith.constant dense<0.000000e+00> : vector<8x128xf32>
    %3 = tpu.matmul %1, %2, %cst {dimension_numbers = #tpu.dot_dimension_numbers<[1], [0], [0], [1], [0, 0, 1, 1], [], []>} : vector<8x256xbf16>, vector<256x128xbf16>, vector<8x128xf32> -> vector<8x128xf32>
    %c0_4 = arith.constant 0 : index
    %c0_5 = arith.constant 0 : index
    %4 = vector.load %arg3[%c0_4, %c0_5] : memref<1x128xf32, #tpu.memory_space<vmem>>, vector<1x128xf32>
    %5 = vector.broadcast %4 : vector<1x128xf32> to vector<8x128xf32>
    %6 = arith.addf %3, %5 : vector<8x128xf32>
    %cst_6 = arith.constant 0.000000e+00 : f32
    %7 = vector.broadcast %cst_6 : f32 to vector<8x128xf32>
    %8 = arith.cmpf oge, %6, %7 : vector<8x128xf32>
    %cst_7 = arith.constant 2.000000e-01 : f32
    %9 = vector.broadcast %cst_7 : f32 to vector<8x128xf32>
    %10 = arith.mulf %9, %6 : vector<8x128xf32>
    %11 = arith.select %8, %6, %10 : vector<8x128xi1>, vector<8x128xf32>
    %12 = arith.truncf %11 : vector<8x128xf32> to vector<8x128xbf16>
    %c0_8 = arith.constant 0 : index
    %c0_9 = arith.constant 0 : index
    %13 = vector.load %arg4[%c0_8, %c0_9] : memref<128x128xbf16, #tpu.memory_space<vmem>>, vector<128x128xbf16>
    %cst_10 = arith.constant dense<0.000000e+00> : vector<8x128xf32>
    %14 = tpu.matmul %12, %13, %cst_10 {dimension_numbers = #tpu.dot_dimension_numbers<[1], [0], [0], [1], [0, 0, 1, 1], [], []>} : vector<8x128xbf16>, vector<128x128xbf16>, vector<8x128xf32> -> vector<8x128xf32>
    %c0_11 = arith.constant 0 : index
    %c0_12 = arith.constant 0 : index
    %15 = vector.load %arg5[%c0_11, %c0_12] : memref<1x128xf32, #tpu.memory_space<vmem>>, vector<1x128xf32>
    %16 = vector.broadcast %15 : vector<1x128xf32> to vector<8x128xf32>
    %17 = arith.addf %14, %16 : vector<8x128xf32>
    %cst_13 = arith.constant 0.000000e+00 : f32
    %18 = vector.broadcast %cst_13 : f32 to vector<8x128xf32>
    %19 = arith.cmpf oge, %17, %18 : vector<8x128xf32>
    %cst_14 = arith.constant 2.000000e-01 : f32
    %20 = vector.broadcast %cst_14 : f32 to vector<8x128xf32>
    %21 = arith.mulf %20, %17 : vector<8x128xf32>
    %22 = arith.select %19, %17, %21 : vector<8x128xi1>, vector<8x128xf32>
    %23 = arith.truncf %22 : vector<8x128xf32> to vector<8x128xbf16>
    %c0_15 = arith.constant 0 : index
    %c0_16 = arith.constant 0 : index
    %24 = vector.load %arg6[%c0_15, %c0_16] : memref<128x128xbf16, #tpu.memory_space<vmem>>, vector<128x128xbf16>
    %cst_17 = arith.constant dense<0.000000e+00> : vector<8x128xf32>
    %25 = tpu.matmul %23, %24, %cst_17 {dimension_numbers = #tpu.dot_dimension_numbers<[1], [0], [0], [1], [0, 0, 1, 1], [], []>} : vector<8x128xbf16>, vector<128x128xbf16>, vector<8x128xf32> -> vector<8x128xf32>
    %c0_18 = arith.constant 0 : index
    %c0_19 = arith.constant 0 : index
    %26 = vector.load %arg7[%c0_18, %c0_19] : memref<1x128xf32, #tpu.memory_space<vmem>>, vector<1x128xf32>
    %27 = vector.broadcast %26 : vector<1x128xf32> to vector<8x128xf32>
    %28 = arith.addf %25, %27 : vector<8x128xf32>
    %29 = math.tanh %28 : vector<8x128xf32>
    %c0_20 = arith.constant 0 : index
    %c0_21 = arith.constant 0 : index
    %c0_22 = arith.constant 0 : index
    %30 = vector.load %arg8[%c0_20, %c0_21, %c0_22] : memref<1x8x128xf32, #tpu.memory_space<vmem>>, vector<1x8x128xf32>
    %31 = vector.shape_cast %30 : vector<1x8x128xf32> to vector<8x128xf32>
    %32 = vector.shape_cast %29 : vector<8x128xf32> to vector<1x8x128xf32>
    tpu.vector_store %arg8[%c0_20, %c0_21, %c0_22], %32 {strides = array<i32>} : memref<1x8x128xf32, #tpu.memory_space<vmem>>, vector<1x8x128xf32>,
    return
  }
  func.func @transform_0(%arg0: i32) -> (i32, i32, i32) {
    %c0_i32 = arith.constant 0 : i32
    %c0_i32_0 = arith.constant 0 : i32
    %c0_i32_1 = arith.constant 0 : i32
    return %arg0, %c0_i32, %c0_i32_0 : i32, i32, i32
  }
  func.func @transform_1(%arg0: i32) -> (i32, i32) {
    %c0_i32 = arith.constant 0 : i32
    %c0_i32_0 = arith.constant 0 : i32
    %c0_i32_1 = arith.constant 0 : i32
    return %c0_i32, %c0_i32_0 : i32, i32
  }
  func.func @transform_2(%arg0: i32) -> (i32, i32) {
    %c0_i32 = arith.constant 0 : i32
    %c0_i32_0 = arith.constant 0 : i32
    %c0_i32_1 = arith.constant 0 : i32
    return %c0_i32, %c0_i32_0 : i32, i32
  }
  func.func @transform_3(%arg0: i32) -> (i32, i32) {
    %c0_i32 = arith.constant 0 : i32
    %c0_i32_0 = arith.constant 0 : i32
    %c0_i32_1 = arith.constant 0 : i32
    return %c0_i32, %c0_i32_0 : i32, i32
  }
  func.func @transform_4(%arg0: i32) -> (i32, i32) {
    %c0_i32 = arith.constant 0 : i32
    %c0_i32_0 = arith.constant 0 : i32
    %c0_i32_1 = arith.constant 0 : i32
    return %c0_i32, %c0_i32_0 : i32, i32
  }
  func.func @transform_5(%arg0: i32) -> (i32, i32) {
    %c0_i32 = arith.constant 0 : i32
    %c0_i32_0 = arith.constant 0 : i32
    %c0_i32_1 = arith.constant 0 : i32
    return %c0_i32, %c0_i32_0 : i32, i32
  }
  func.func @transform_6(%arg0: i32) -> (i32, i32) {
    %c0_i32 = arith.constant 0 : i32
    %c0_i32_0 = arith.constant 0 : i32
    %c0_i32_1 = arith.constant 0 : i32
    return %c0_i32, %c0_i32_0 : i32, i32
  }
  func.func @transform_7(%arg0: i32) -> (i32, i32, i32) {
    %c0_i32 = arith.constant 0 : i32
    %c0_i32_0 = arith.constant 0 : i32
    %c0_i32_1 = arith.constant 0 : i32
    return %arg0, %c0_i32, %c0_i32_0 : i32, i32, i32
  }
}

module attributes {stable_mosaic.version = 11 : i64} {
  func.func @_laso_kernel(%arg0: i32, %arg1: memref<1x8x256xbf16, #tpu.memory_space<vmem>>, %arg2: memref<256x128xbf16, #tpu.memory_space<vmem>>, %arg3: memref<1x128xf32, #tpu.memory_space<vmem>>, %arg4: memref<128x128xbf16, #tpu.memory_space<vmem>>, %arg5: memref<1x128xf32, #tpu.memory_space<vmem>>, %arg6: memref<128x128xbf16, #tpu.memory_space<vmem>>, %arg7: memref<1x128xf32, #tpu.memory_space<vmem>>, %arg8: memref<1x8x128xf32, #tpu.memory_space<vmem>>) attributes {dimension_semantics = [#tpu.dimension_semantics<parallel>], iteration_bounds = array<i64: 4>, scalar_prefetch = 0 : i64, scratch_operands = 0 : i64, tpu.core_type = #tpu.core_type<tc>, window_params = [{transform_indices = @transform_0, window_bounds = array<i64: 1, 8, 256>}, {pipeline_mode = #tpu.pipeline_mode<synchronous>, transform_indices = @transform_1, window_bounds = array<i64: 256, 128>}, {pipeline_mode = #tpu.pipeline_mode<synchronous>, transform_indices = @transform_2, window_bounds = array<i64: 1, 128>}, {pipeline_mode = #tpu.pipeline_mode<synchronous>, transform_indices = @transform_3, window_bounds = array<i64: 128, 128>}, {pipeline_mode = #tpu.pipeline_mode<synchronous>, transform_indices = @transform_4, window_bounds = array<i64: 1, 128>}, {pipeline_mode = #tpu.pipeline_mode<synchronous>, transform_indices = @transform_5, window_bounds = array<i64: 128, 128>}, {pipeline_mode = #tpu.pipeline_mode<synchronous>, transform_indices = @transform_6, window_bounds = array<i64: 1, 128>}, {transform_indices = @transform_7, window_bounds = array<i64: 1, 8, 128>}]} {
    %c0 = arith.constant 0 : index
    %c0_0 = arith.constant 0 : index
    %c0_1 = arith.constant 0 : index
    %0 = vector.load %arg1[%c0, %c0_0, %c0_1] : memref<1x8x256xbf16, #tpu.memory_space<vmem>>, vector<1x8x256xbf16>
    %1 = vector.shape_cast %0 : vector<1x8x256xbf16> to vector<8x256xbf16>
    %c0_2 = arith.constant 0 : index
    %c0_3 = arith.constant 0 : index
    %2 = vector.load %arg2[%c0_2, %c0_3] : memref<256x128xbf16, #tpu.memory_space<vmem>>, vector<256x128xbf16>
    %cst = arith.constant dense<0.000000e+00> : vector<8x128xf32>
    %3 = tpu.matmul %1, %2, %cst {dimension_numbers = #tpu.dot_dimension_numbers<[1], [0], [0], [1], [0, 0, 1, 1], [], []>} : vector<8x256xbf16>, vector<256x128xbf16>, vector<8x128xf32> -> vector<8x128xf32>
    %c0_4 = arith.constant 0 : index
    %c0_5 = arith.constant 0 : index
    %4 = vector.load %arg3[%c0_4, %c0_5] : memref<1x128xf32, #tpu.memory_space<vmem>>, vector<1x128xf32>
    %5 = vector.broadcast %4 : vector<1x128xf32> to vector<8x128xf32>
    %6 = arith.addf %3, %5 : vector<8x128xf32>
    %cst_6 = arith.constant 0.000000e+00 : f32
    %7 = vector.broadcast %cst_6 : f32 to vector<8x128xf32>
    %8 = arith.cmpf oge, %6, %7 : vector<8x128xf32>
    %cst_7 = arith.constant 2.000000e-01 : f32
    %9 = vector.broadcast %cst_7 : f32 to vector<8x128xf32>
    %10 = arith.mulf %9, %6 : vector<8x128xf32>
    %11 = arith.select %8, %6, %10 : vector<8x128xi1>, vector<8x128xf32>
    %12 = arith.truncf %11 : vector<8x128xf32> to vector<8x128xbf16>
    %c0_8 = arith.constant 0 : index
    %c0_9 = arith.constant 0 : index
    %13 = vector.load %arg4[%c0_8, %c0_9] : memref<128x128xbf16, #tpu.memory_space<vmem>>, vector<128x128xbf16>
    %cst_10 = arith.constant dense<0.000000e+00> : vector<8x128xf32>
    %14 = tpu.matmul %12, %13, %cst_10 {dimension_numbers = #tpu.dot_dimension_numbers<[1], [0], [0], [1], [0, 0, 1, 1], [], []>} : vector<8x128xbf16>, vector<128x128xbf16>, vector<8x128xf32> -> vector<8x128xf32>
    %c0_11 = arith.constant 0 : index
    %c0_12 = arith.constant 0 : index
    %15 = vector.load %arg5[%c0_11, %c0_12] : memref<1x128xf32, #tpu.memory_space<vmem>>, vector<1x128xf32>
    %16 = vector.broadcast %15 : vector<1x128xf32> to vector<8x128xf32>
    %17 = arith.addf %14, %16 : vector<8x128xf32>
    %cst_13 = arith.constant 0.000000e+00 : f32
    %18 = vector.broadcast %cst_13 : f32 to vector<8x128xf32>
    %19 = arith.cmpf oge, %17, %18 : vector<8x128xf32>
    %cst_14 = arith.constant 2.000000e-01 : f32
    %20 = vector.broadcast %cst_14 : f32 to vector<8x128xf32>
    %21 = arith.mulf %20, %17 : vector<8x128xf32>
    %22 = arith.select %19, %17, %21 : vector<8x128xi1>, vector<8x128xf32>
    %23 = arith.truncf %22 : vector<8x128xf32> to vector<8x128xbf16>
    %c0_15 = arith.constant 0 : index
    %c0_16 = arith.constant 0 : index
    %24 = vector.load %arg6[%c0_15, %c0_16] : memref<128x128xbf16, #tpu.memory_space<vmem>>, vector<128x128xbf16>
    %cst_17 = arith.constant dense<0.000000e+00> : vector<8x128xf32>
    %25 = tpu.matmul %23, %24, %cst_17 {dimension_numbers = #tpu.dot_dimension_numbers<[1], [0], [0], [1], [0, 0, 1, 1], [], []>} : vector<8x128xbf16>, vector<128x128xbf16>, vector<8x128xf32> -> vector<8x128xf32>
    %c0_18 = arith.constant 0 : index
    %c0_19 = arith.constant 0 : index
    %26 = vector.load %arg7[%c0_18, %c0_19] : memref<1x128xf32, #tpu.memory_space<vmem>>, vector<1x128xf32>
    %27 = vector.broadcast %26 : vector<1x128xf32> to vector<8x128xf32>
    %28 = arith.addf %25, %27 : vector<8x128xf32>
    %29 = math.tanh %28 : vector<8x128xf32>
    %c0_20 = arith.constant 0 : index
    %c0_21 = arith.constant 0 : index
    %c0_22 = arith.constant 0 : index
    %30 = vector.load %arg8[%c0_20, %c0_21, %c0_22] : memref<1x8x128xf32, #tpu.memory_space<vmem>>, vector<1x8x128xf32>
    %31 = vector.shape_cast %30 : vector<1x8x128xf32> to vector<8x128xf32>
    %32 = vector.shape_cast %29 : vector<8x128xf32> to vector<1x8x128xf32>
    tpu.vector_store %arg8[%c0_20, %c0_21, %c0_22], %32 {strides = array<i32>} : memref<1x8x128xf32, #tpu.memory_space<vmem>>, vector<1x8x128xf32>,
    return
  }
  func.func @transform_0(%arg0: i32) -> (i32, i32, i32) {
    %c0_i32 = arith.constant 0 : i32
    %c0_i32_0 = arith.constant 0 : i32
    %c0_i32_1 = arith.constant 0 : i32
    return %arg0, %c0_i32, %c0_i32_0 : i32, i32, i32
  }
  func.func @transform_1(%arg0: i32) -> (i32, i32) {
    %c0_i32 = arith.constant 0 : i32
    %c0_i32_0 = arith.constant 0 : i32
    %c0_i32_1 = arith.constant 0 : i32
    return %c0_i32, %c0_i32_0 : i32, i32
  }
  func.func @transform_2(%arg0: i32) -> (i32, i32) {
    %c0_i32 = arith.constant 0 : i32
    %c0_i32_0 = arith.constant 0 : i32
    %c0_i32_1 = arith.constant 0 : i32
    return %c0_i32, %c0_i32_0 : i32, i32
  }
  func.func @transform_3(%arg0: i32) -> (i32, i32) {
    %c0_i32 = arith.constant 0 : i32
    %c0_i32_0 = arith.constant 0 : i32
    %c0_i32_1 = arith.constant 0 : i32
    return %c0_i32, %c0_i32_0 : i32, i32
  }
  func.func @transform_4(%arg0: i32) -> (i32, i32) {
    %c0_i32 = arith.constant 0 : i32
    %c0_i32_0 = arith.constant 0 : i32
    %c0_i32_1 = arith.constant 0 : i32
    return %c0_i32, %c0_i32_0 : i32, i32
  }
  func.func @transform_5(%arg0: i32) -> (i32, i32) {
    %c0_i32 = arith.constant 0 : i32
    %c0_i32_0 = arith.constant 0 : i32
    %c0_i32_1 = arith.constant 0 : i32
    return %c0_i32, %c0_i32_0 : i32, i32
  }
  func.func @transform_6(%arg0: i32) -> (i32, i32) {
    %c0_i32 = arith.constant 0 : i32
    %c0_i32_0 = arith.constant 0 : i32
    %c0_i32_1 = arith.constant 0 : i32
    return %c0_i32, %c0_i32_0 : i32, i32
  }
  func.func @transform_7(%arg0: i32) -> (i32, i32, i32) {
    %c0_i32 = arith.constant 0 : i32
    %c0_i32_0 = arith.constant 0 : i32
    %c0_i32_1 = arith.constant 0 : i32
    return %arg0, %c0_i32, %c0_i32_0 : i32, i32, i32
  }
}

</mosaic_0001>

<bundles_post_ra>
// kernel: set_ops_forward.9
= control target key start
LH: loop header
LB: loop body
LE: loop exit
PB: predicated region body
PF: predicated region fallthrough
CT: control target
= control target key end

     0   :  { %s900_s24 = smov 0   ;;  %s1029_s0 = inlined_call_operand.vmem [shape: bf16[6,8,256], index: 0, kind: input, shape index: {}]   ;;  %s1030_s1 = inlined_call_operand.vmem [shape: bf16[256,128], index: 1, kind: input, shape index: {}]   ;;  %s1031_s2 = inlined_call_operand.vmem [shape: f32[1,128], index: 2, kind: input, shape index: {}]   ;;  %s1032_s3 = inlined_call_operand.vmem [shape: bf16[128,128], index: 3, kind: input, shape index: {}]   ;;  %s1033_s4 = inlined_call_operand.vmem [shape: f32[1,128], index: 4, kind: input, shape index: {}]   ;;  %s1034_s5 = inlined_call_operand.vmem [shape: bf16[128,128], index: 5, kind: input, shape index: {}]   ;;  %s1035_s6 = inlined_call_operand.vmem [shape: f32[1,128], index: 6, kind: input, shape index: {}]   ;;  %s1036_s7 = inlined_call_operand.vmem [shape: f32[6,8,128], index: 7, kind: output, shape index: {}]  }
   0x1 LB: > { %s668_s25 = sadd.s32 4294967295, %s858_s24   ;;  %p672_p0 = scmp.ge.s32.totalorder %s858_s24, 1  ;;  %s858_s24 = sphi %s900_s24, %s17_s24  }
   0x2   : > { %p237_p1 = scmp.lt.s32.totalorder %s858_s24, 7 }
   0x4   : > { %p238_p2 = pnand %p672_p0, %p237_p1 }
   0x5   : > { %p268_p3 = scmp.lt.s32.totalorder (!%p238_p2), %s668_s25, 5 }
   0x6   : > { %241 = sbr.rel (%p238_p2) target bundleno = 459 (0x1cb), region = 48 }
   0xb   : > { %v814_v0 = vld [vmem:[%s1030_s1 + $0x38] sm:$0xff]  ;;  %v813_v2 = vld [vmem:[%s1030_s1 + $0x30] sm:$0xff]  ;;  %v812_v5 = vld [vmem:[%s1030_s1 + $0x28] sm:$0xff]  ;;  %s1038_s25 = smov (!%p268_p3, %s668_s25), 5 }
   0xc   : > { %v822_v1 = vld [vmem:[%s1030_s1 + $0x78] sm:$0xff]  ;;  %417 = vmatpush.bf16.msra.mxu0 %v814_v0  ;;  %v821_v3 = vld [vmem:[%s1030_s1 + $0x70] sm:$0xff]  ;;  %v820_v6 = vld [vmem:[%s1030_s1 + $0x68] sm:$0xff]  ;;  %s806_s10 = sshll.u32 %s1038_s25, 3 }
   0xd   : > { %430 = vmatpush.bf16.msra.mxu1 %v822_v1  ;;  %v830_v4 = vld [vmem:[%s1032_s3 + $0x38] sm:$0xff]  ;;  %v829_v7 = vld [vmem:[%s1032_s3 + $0x30] sm:$0xff]  ;;  %v811_v8 = vld [vmem:[%s1030_s1 + $0x20] sm:$0xff]  ;;  %s272_s17 = scalar_lea.vmem %s1029_s0, %s806_s10  ;;  %s276_s18 = scalar_lea.vmem %s1036_s7, %s806_s10 }
   0xe   : > { %515 = vmatpush.bf16.msra.mxu2 %v830_v4  ;;  %v819_v9 = vld [vmem:[%s1030_s1 + $0x60] sm:$0xff]  ;;  %v828_v10 = vld [vmem:[%s1032_s3 + $0x28] sm:$0xff]  ;;  %v810_v11 = vld [vmem:[%s1030_s1 + $0x18] sm:$0xff] }
   0xf   : > { %v818_v12 = vld [vmem:[%s1030_s1 + $0x58] sm:$0xff]  ;;  %v827_v13 = vld [vmem:[%s1032_s3 + $0x20] sm:$0xff]  ;;  %v809_v14 = vld [vmem:[%s1030_s1 + $0x10] sm:$0xff] }
  0x10   : > { %418 = vmatpush.bf16.msra.mxu0 %v813_v2  ;;  %v817_v15 = vld [vmem:[%s1030_s1 + $0x50] sm:$0xff]  ;;  %v826_v16 = vld [vmem:[%s1032_s3 + $0x18] sm:$0xff]  ;;  %v808_v17 = vld [vmem:[%s1030_s1 + $0x8] sm:$0xff] }
  0x11   : > { %431 = vmatpush.bf16.msra.mxu1 %v821_v3  ;;  %v816_v18 = vld [vmem:[%s1030_s1 + $0x48] sm:$0xff]  ;;  %v277_v19 = vld [vmem:[%s272_s17] sm:$0xff]  ;;  %v825_v20 = vld [vmem:[%s1032_s3 + $0x10] sm:$0xff] }
  0x12   : > { %516 = vmatpush.bf16.msra.mxu2 %v829_v7  ;;  %v315_v21 = vunpack.c.l.b16 %v277_v19  ;;  %v316_v22 = vunpack.c.h.b16 %v277_v19  ;;  %v807_v23 = vld [vmem:[%s1030_s1] sm:$0xff]  ;;  %v824_v27 = vld [vmem:[%s1032_s3 + $0x8] sm:$0xff]  ;;  %v838_v29 = vld [vmem:[%s1034_s5 + $0x38] sm:$0xff] }
  0x13   : > { %v815_v24 = vld [vmem:[%s1030_s1 + $0x40] sm:$0xff]  ;;  %600 = vmatpush.bf16.msra.mxu3 %v838_v29  ;;  %v837_v30 = vld [vmem:[%s1034_s5 + $0x30] sm:$0xff]  ;;  %v836_v31 = vld [vmem:[%s1034_s5 + $0x28] sm:$0xff] }
  0x14   : > { %419 = vmatpush.bf16.msra.mxu0 %v812_v5  ;;  %v317_v25 = vpack.c.b16 %v315_v21, %v315_v21  ;;  %v318_v26 = vpack.c.b16 %v316_v22, %v316_v22  ;;  %v823_v28 = vld [vmem:[%s1032_s3] sm:$0xff]  ;;  %v834_v33 = vld [vmem:[%s1034_s5 + $0x18] sm:$0xff]  ;;  %v833_v34 = vld [vmem:[%s1034_s5 + $0x10] sm:$0xff] }
  0x15   : > { %432 = vmatpush.bf16.msra.mxu1 %v820_v6  ;;  %v835_v32 = vld [vmem:[%s1034_s5 + $0x20] sm:$0xff]  ;;  %v832_v45 = vld [vmem:[%s1034_s5 + $0x8] sm:$0xff] }
  0x16   : > { %517 = vmatpush.bf16.msra.mxu2 %v828_v10  ;;  %v847_v35 = vld [vmem:[%s1031_s2] ss:$0 sm:$0xff] }
  0x17   : > { %601 = vmatpush.bf16.msra.mxu3 %v837_v30  ;;  %v831_v46 = vld [vmem:[%s1034_s5] sm:$0xff] }
  0x18   : > { %420 = vmatpush.bf16.msra.mxu0 %v811_v8  ;;  %v848_v47 = vld [vmem:[%s1033_s4] ss:$0 sm:$0xff] }
  0x19   : > { %433 = vmatpush.bf16.msra.mxu1 %v819_v9  ;;  %v849_v54 = vld [vmem:[%s1035_s6] ss:$0 sm:$0xff] }
  0x1a   : > { %518 = vmatpush.bf16.msra.mxu2 %v827_v13 }
  0x1b   : > { %602 = vmatpush.bf16.msra.mxu3 %v836_v31 }
  0x1c   : > { %421 = vmatpush.bf16.msra.mxu0 %v810_v11 }
  0x1d   : > { %434 = vmatpush.bf16.msra.mxu1 %v818_v12 }
  0x1e   : > { %519 = vmatpush.bf16.msra.mxu2 %v826_v16 }
  0x1f   : > { %603 = vmatpush.bf16.msra.mxu3 %v835_v32 }
  0x20   : > { %422 = vmatpush.bf16.msra.mxu0 %v809_v14 }
  0x21   : > { %435 = vmatpush.bf16.msra.mxu1 %v817_v15 }
  0x22   : > { %520 = vmatpush.bf16.msra.mxu2 %v825_v20 }
  0x23   : > { %604 = vmatpush.bf16.msra.mxu3 %v834_v33 }
  0x24   : > { %423 = vmatpush.bf16.msra.mxu0 %v808_v17 }
  0x25   : > { %436 = vmatpush.bf16.msra.mxu1 %v816_v18 }
  0x26   : > { %521 = vmatpush.bf16.msra.mxu2 %v824_v27 }
  0x27   : > { %605 = vmatpush.bf16.msra.mxu3 %v833_v34 }
  0x28   : > { %424 = vmatpush.bf16.msra.mxu0 %v807_v23 }
  0x29   : > { %437 = vmatpush.bf16.msra.mxu1 %v815_v24 }
  0x2a   : > { %522 = vmatpush.bf16.msra.mxu2 %v823_v28 }
  0x2b   : > { %425 = vmatmul.bf16.vlgmr.msra.gmra.mxu0 %v317_v25  ;;  %606 = vmatpush.bf16.msra.mxu3 %v832_v45 }
  0x2c   : > { %438 = vmatmul.bf16.vlgmr.msra.gmra.mxu1 %v318_v26 }
  0x2f   : > { %607 = vmatpush.bf16.msra.mxu3 %v831_v46 }
  0xa8   : > { %v426_v36 = vpop.f32.mrf.mxu0 }
  0xa9   : > { %v439_v37 = vpop.f32.mrf.mxu1  ;;  %v427_v38 = vadd.f32 %v847_v35, %v426_v36 }
  0xab   : > { %v440_v39 = vadd.f32 %v439_v37, %v427_v38 }
  0xad   : > { %v444_v40 = vmul.f32 0.2, %v440_v39  ;;  %vm443_vm0 = vcmp.ge.f32.partialorder %v440_v39, 0.0 }
  0xaf   : > { %v445_v41 = vsel %vm443_vm0, %v440_v39, %v444_v40 }
  0xb0   : > { %v428_v42 = vpop.f32.mrf.mxu0  ;;  %v446_v44 = vpack.c.bf16 %v445_v41, %v445_v41 }
  0xb1   : > { %v441_v43 = vpop.f32.mrf.mxu1 }
  0xb2   : > { %523 = vmatmul.bf16.vlgmr.msra.gmra.mxu2 %v446_v44 }
 0x135   : > { %v524_v48 = vpop.f32.mrf.mxu2 }
 0x136   : > { %v525_v49 = vadd.f32 %v848_v47, %v524_v48 }
 0x138   : > { %v529_v50 = vmul.f32 0.2, %v525_v49  ;;  %vm528_vm1 = vcmp.ge.f32.partialorder %v525_v49, 0.0 }
 0x13a   : > { %v530_v51 = vsel %vm528_vm1, %v525_v49, %v529_v50 }
 0x13b   : > { %v531_v52 = vpack.c.bf16 %v530_v51, %v530_v51 }
 0x13d   : > { %v526_v53 = vpop.f32.mrf.mxu2  ;;  %608 = vmatmul.bf16.vlgmr.msra.gmra.mxu3 %v531_v52 }
 0x1c0   : > { %v609_v55 = vpop.f32.mrf.mxu3 }
 0x1c1   : > { %v610_v56 = vadd.f32 %v849_v54, %v609_v55 }
 0x1c3   : > { %850 = vtanh.f32 %v610_v56 }
 0x1c8   : > { %v611_v57 = vpop.f32.mrf.mxu3 }
 0x1c9   : > { %v851_v58 = vpop.eup %850 }
 0x1ca   : > { %614 = vst [vmem:[%s276_s18] sm:$0xff] %v851_v58 }
 0x1cb PF: > { %s17_s24 = sadd.s32 1, %s858_s24  }
 0x1cc   : > { %p14_p4 = scmp.ge.s32.totalorder %s17_s24, 8  }
 0x1ce   :  { %16 = sbr.rel (!%p14_p4) target bundleno = 1 (0x1), region = 78 }

// kernel: set_ops_forward.6
= control target key start
LH: loop header
LB: loop body
LE: loop exit
PB: predicated region body
PF: predicated region fallthrough
CT: control target
= control target key end

     0   :  { %12 = vsyncpa [#allocation3], 0  ;;  %s1141_s0 = inlined_call_operand.vmem [shape: bf16[2,8,256], index: 0, kind: input, shape index: {}]   ;;  %s1142_s1 = inlined_call_operand.hbm [shape: bf16[256,128], index: 1, kind: input, shape index: {}]   ;;  %s1143_s2 = inlined_call_operand.vmem [shape: f32[1,128], index: 2, kind: input, shape index: {}]   ;;  %s1144_s3 = inlined_call_operand.vmem [shape: bf16[128,128], index: 3, kind: input, shape index: {}]   ;;  %s1145_s4 = inlined_call_operand.vmem [shape: f32[1,128], index: 4, kind: input, shape index: {}]   ;;  %s1146_s5 = inlined_call_operand.hbm [shape: bf16[128,128], index: 5, kind: input, shape index: {}]   ;;  %s1147_s6 = inlined_call_operand.vmem [shape: f32[1,128], index: 6, kind: input, shape index: {}]   ;;  %s1148_s7 = inlined_call_operand.vmem [shape: f32[2,8,128], index: 7, kind: output, shape index: {}]  }
   0x1   :  { %13 = vsyncpa [#allocation5], 0  ;;  %s1055_s24 = smov 0  }
   0x2 LB: > { %s213_s27 = sshll.u32 %s1142_s1, 4  ;;  %s1064_s28 = sadd.s32 4294967295, %s1009_s24   ;;  %s1009_s24 = sphi %s1055_s24, %s19_s24   ;;  %s214_s27 = int_to_ptr.hbm [resolvable:$true] %s213_s27 }
   0x3   : > { %p726_p0 = scmp.ge.s32.totalorder %s1009_s24, 1  ;;  %p202_p1 = scmp.lt.s32.totalorder %s1009_s24, 3 }
   0x4   : > { %p914_p2 = scmp.eq.s32.totalorder %s1064_s28, 0  ;;  %s1011_s30 = smov [#allocation2]  }
   0x5   : > { %p1069_p3 = pnand %p726_p0, %p202_p1  ;;  %s215_s8 = sshll.u32 %s1011_s30, 4  ;;  %s216_s8 = int_to_ptr.vmem [resolvable:$true] %s215_s8 }
   0x6   : > { %s236_s11 = sshll.u32 %s1146_s5, 4  ;;  %s1012_s12 = smov [#allocation4]   ;;  %s237_s11 = int_to_ptr.hbm [resolvable:$true] %s236_s11 }
   0x7   : > { %p907_p4 = pneg %p1069_p3  ;;  %s238_s13 = sshll.u32 %s1012_s12, 4  ;;  %s239_s13 = int_to_ptr.vmem [resolvable:$true] %s238_s13 }
   0x8   : > { %s1013_s14 = smov 64   ;;  %s1014_s15 = smov 4  }
   0x9   : > { %p908_p5 = pnand %p914_p2, %p907_p4  ;;  %265 = sbr.rel (%p1069_p3) target bundleno = 465 (0x1d1), region = 48 }
   0xb   : > { %910 = dma.hbm_to_vmem [thread:$0]  (!%p908_p5), %s214_s27, 2048, %s216_s8, [#allocation3], %s1013_s14, %s1013_s14, %s1014_s15  }
   0xc   : > { %913 = dma.hbm_to_vmem [thread:$0]  (!%p908_p5), %s237_s11, 1024, %s239_s13, [#allocation5], %s1013_s14, %s1013_s14, %s1014_s15  }
   0xe   : > { %1000 = dma.done.wait (%p914_p2), [#allocation3], 2048  }
   0xf   : > { %1002 = vsyncadd (%p914_p2), [#allocation3], 4294965248 }
  0x10   : > { %1004 = dma.done.wait (%p914_p2), [#allocation5], 1024  }
  0x11   : > { %1006 = vsyncadd (%p914_p2), [#allocation5], 4294966272  ;;  %v874_v0 = vld [vmem:[#allocation2 + $0x38] sm:$0xff]  ;;  %v873_v2 = vld [vmem:[#allocation2 + $0x30] sm:$0xff]  ;;  %p302_p6 = scmp.lt.s32.totalorder %s1064_s28, 1 }
  0x12   : > { %v882_v1 = vld [vmem:[#allocation2 + $0x78] sm:$0xff]  ;;  %451 = vmatpush.bf16.msra.mxu0 %v874_v0  ;;  %v881_v3 = vld [vmem:[#allocation2 + $0x70] sm:$0xff]  ;;  %v872_v5 = vld [vmem:[#allocation2 + $0x28] sm:$0xff] }
  0x13   : > { %464 = vmatpush.bf16.msra.mxu1 %v882_v1  ;;  %v890_v4 = vld [vmem:[%s1144_s3 + $0x38] sm:$0xff]  ;;  %v880_v6 = vld [vmem:[#allocation2 + $0x68] sm:$0xff]  ;;  %v871_v8 = vld [vmem:[#allocation2 + $0x20] sm:$0xff]  ;;  %s1151_s28 = smov (!%p302_p6, %s1064_s28), 1 }
  0x14   : > { %549 = vmatpush.bf16.msra.mxu2 %v890_v4  ;;  %v889_v7 = vld [vmem:[%s1144_s3 + $0x30] sm:$0xff]  ;;  %v879_v9 = vld [vmem:[#allocation2 + $0x60] sm:$0xff]  ;;  %v870_v11 = vld [vmem:[#allocation2 + $0x18] sm:$0xff]  ;;  %s866_s25 = sshll.u32 %s1151_s28, 3 }
  0x15   : > { %v888_v10 = vld [vmem:[%s1144_s3 + $0x28] sm:$0xff]  ;;  %v878_v12 = vld [vmem:[#allocation2 + $0x58] sm:$0xff]  ;;  %v869_v14 = vld [vmem:[#allocation2 + $0x10] sm:$0xff]  ;;  %s306_s29 = scalar_lea.vmem %s1141_s0, %s866_s25  ;;  %s310_s23 = scalar_lea.vmem %s1148_s7, %s866_s25 }
  0x16   : > { %452 = vmatpush.bf16.msra.mxu0 %v873_v2  ;;  %v887_v13 = vld [vmem:[%s1144_s3 + $0x20] sm:$0xff]  ;;  %v877_v15 = vld [vmem:[#allocation2 + $0x50] sm:$0xff]  ;;  %v868_v17 = vld [vmem:[#allocation2 + $0x8] sm:$0xff] }
  0x17   : > { %465 = vmatpush.bf16.msra.mxu1 %v881_v3  ;;  %v886_v16 = vld [vmem:[%s1144_s3 + $0x18] sm:$0xff]  ;;  %v876_v18 = vld [vmem:[#allocation2 + $0x48] sm:$0xff]  ;;  %v311_v19 = vld [vmem:[%s306_s29] sm:$0xff] }
  0x18   : > { %550 = vmatpush.bf16.msra.mxu2 %v889_v7  ;;  %v885_v20 = vld [vmem:[%s1144_s3 + $0x10] sm:$0xff]  ;;  %v349_v21 = vunpack.c.l.b16 %v311_v19  ;;  %v350_v22 = vunpack.c.h.b16 %v311_v19  ;;  %v867_v23 = vld [vmem:[#allocation2] sm:$0xff]  ;;  %v883_v28 = vld [vmem:[%s1144_s3] sm:$0xff] }
  0x19   : > { %v875_v24 = vld [vmem:[#allocation2 + $0x40] sm:$0xff]  ;;  %v898_v29 = vld [vmem:[#allocation4 + $0x38] sm:$0xff]  ;;  %v897_v30 = vld [vmem:[#allocation4 + $0x30] sm:$0xff] }
  0x1a   : > { %453 = vmatpush.bf16.msra.mxu0 %v872_v5  ;;  %v351_v25 = vpack.c.b16 %v349_v21, %v349_v21  ;;  %v352_v26 = vpack.c.b16 %v350_v22, %v350_v22  ;;  %v884_v27 = vld [vmem:[%s1144_s3 + $0x8] sm:$0xff]  ;;  %634 = vmatpush.bf16.msra.mxu3 %v898_v29  ;;  %v896_v31 = vld [vmem:[#allocation4 + $0x28] sm:$0xff]  ;;  %v894_v33 = vld [vmem:[#allocation4 + $0x18] sm:$0xff] }
  0x1b   : > { %466 = vmatpush.bf16.msra.mxu1 %v880_v6  ;;  %v895_v32 = vld [vmem:[#allocation4 + $0x20] sm:$0xff]  ;;  %v893_v34 = vld [vmem:[#allocation4 + $0x10] sm:$0xff]  ;;  %v930_v35 = vld [vmem:[%s1143_s2] ss:$0 sm:$0xff] }
  0x1c   : > { %551 = vmatpush.bf16.msra.mxu2 %v888_v10  ;;  %v892_v45 = vld [vmem:[#allocation4 + $0x8] sm:$0xff]  ;;  %v891_v46 = vld [vmem:[#allocation4] sm:$0xff]  ;;  %v931_v47 = vld [vmem:[%s1145_s4] ss:$0 sm:$0xff] }
  0x1d   : > { %v932_v54 = vld [vmem:[%s1147_s6] ss:$0 sm:$0xff] }
  0x1e   : > { %454 = vmatpush.bf16.msra.mxu0 %v871_v8  ;;  %635 = vmatpush.bf16.msra.mxu3 %v897_v30 }
  0x1f   : > { %467 = vmatpush.bf16.msra.mxu1 %v879_v9 }
  0x20   : > { %552 = vmatpush.bf16.msra.mxu2 %v887_v13 }
  0x22   : > { %455 = vmatpush.bf16.msra.mxu0 %v870_v11  ;;  %636 = vmatpush.bf16.msra.mxu3 %v896_v31 }
  0x23   : > { %468 = vmatpush.bf16.msra.mxu1 %v878_v12 }
  0x24   : > { %553 = vmatpush.bf16.msra.mxu2 %v886_v16 }
  0x26   : > { %456 = vmatpush.bf16.msra.mxu0 %v869_v14  ;;  %637 = vmatpush.bf16.msra.mxu3 %v895_v32 }
  0x27   : > { %469 = vmatpush.bf16.msra.mxu1 %v877_v15 }
  0x28   : > { %554 = vmatpush.bf16.msra.mxu2 %v885_v20 }
  0x2a   : > { %457 = vmatpush.bf16.msra.mxu0 %v868_v17  ;;  %638 = vmatpush.bf16.msra.mxu3 %v894_v33 }
  0x2b   : > { %470 = vmatpush.bf16.msra.mxu1 %v876_v18 }
  0x2c   : > { %555 = vmatpush.bf16.msra.mxu2 %v884_v27 }
  0x2e   : > { %458 = vmatpush.bf16.msra.mxu0 %v867_v23  ;;  %639 = vmatpush.bf16.msra.mxu3 %v893_v34 }
  0x2f   : > { %471 = vmatpush.bf16.msra.mxu1 %v875_v24 }
  0x30   : > { %556 = vmatpush.bf16.msra.mxu2 %v883_v28 }
  0x31   : > { %459 = vmatmul.bf16.vlgmr.msra.gmra.mxu0 %v351_v25 }
  0x32   : > { %472 = vmatmul.bf16.vlgmr.msra.gmra.mxu1 %v352_v26  ;;  %640 = vmatpush.bf16.msra.mxu3 %v892_v45 }
  0x36   : > { %641 = vmatpush.bf16.msra.mxu3 %v891_v46 }
  0xae   : > { %v460_v36 = vpop.f32.mrf.mxu0 }
  0xaf   : > { %v473_v37 = vpop.f32.mrf.mxu1  ;;  %v461_v38 = vadd.f32 %v930_v35, %v460_v36 }
  0xb1   : > { %v474_v39 = vadd.f32 %v473_v37, %v461_v38 }
  0xb3   : > { %v478_v40 = vmul.f32 0.2, %v474_v39  ;;  %vm477_vm0 = vcmp.ge.f32.partialorder %v474_v39, 0.0 }
  0xb5   : > { %v479_v41 = vsel %vm477_vm0, %v474_v39, %v478_v40 }
  0xb6   : > { %v462_v42 = vpop.f32.mrf.mxu0  ;;  %v480_v44 = vpack.c.bf16 %v479_v41, %v479_v41 }
  0xb7   : > { %v475_v43 = vpop.f32.mrf.mxu1 }
  0xb8   : > { %557 = vmatmul.bf16.vlgmr.msra.gmra.mxu2 %v480_v44 }
 0x13b   : > { %v558_v48 = vpop.f32.mrf.mxu2 }
 0x13c   : > { %v559_v49 = vadd.f32 %v931_v47, %v558_v48 }
 0x13e   : > { %v563_v50 = vmul.f32 0.2, %v559_v49  ;;  %vm562_vm1 = vcmp.ge.f32.partialorder %v559_v49, 0.0 }
 0x140   : > { %v564_v51 = vsel %vm562_vm1, %v559_v49, %v563_v50 }
 0x141   : > { %v565_v52 = vpack.c.bf16 %v564_v51, %v564_v51 }
 0x143   : > { %v560_v53 = vpop.f32.mrf.mxu2  ;;  %642 = vmatmul.bf16.vlgmr.msra.gmra.mxu3 %v565_v52 }
 0x1c6   : > { %v643_v55 = vpop.f32.mrf.mxu3 }
 0x1c7   : > { %v644_v56 = vadd.f32 %v932_v54, %v643_v55 }
 0x1c9   : > { %933 = vtanh.f32 %v644_v56 }
 0x1ce   : > { %v645_v57 = vpop.f32.mrf.mxu3 }
 0x1cf   : > { %v934_v58 = vpop.eup %933 }
 0x1d0   : > { %648 = vst [vmem:[%s310_s23] sm:$0xff] %v934_v58 }
 0x1d1 PF: > { %s19_s24 = sadd.s32 1, %s1009_s24  }
 0x1d2   : > { %p16_p7 = scmp.ge.s32.totalorder %s19_s24, 4  }
 0x1d4   :  { %18 = sbr.rel (!%p16_p7) target bundleno = 2 (0x2), region = 87 }
 0x1d9   :  { %668 = vsyncpa [#allocation3], 1 }
 0x1da   :  { %670 = vsyncpa [#allocation3 + $0x1], 1 }
 0x1db   :  { %671 = vsyncpa [#allocation5], 1 }

// kernel: set_ops_forward.10
= control target key start
LH: loop header
LB: loop body
LE: loop exit
PB: predicated region body
PF: predicated region fallthrough
CT: control target
= control target key end

     0   :  { %12 = vsyncpa [#allocation3], 0  ;;  %s981_s24 = smov 0   ;;  %s1094_s0 = inlined_call_operand.vmem [shape: bf16[2,8,256], index: 0, kind: input, shape index: {}]   ;;  %s1095_s1 = inlined_call_operand.vmem [shape: bf16[256,128], index: 1, kind: input, shape index: {}]   ;;  %s1096_s2 = inlined_call_operand.vmem [shape: f32[1,128], index: 2, kind: input, shape index: {}]   ;;  %s1097_s3 = inlined_call_operand.vmem [shape: bf16[128,128], index: 3, kind: input, shape index: {}]   ;;  %s1098_s4 = inlined_call_operand.vmem [shape: f32[1,128], index: 4, kind: input, shape index: {}]   ;;  %s1099_s5 = inlined_call_operand.hbm [shape: bf16[128,128], index: 5, kind: input, shape index: {}]   ;;  %s1100_s6 = inlined_call_operand.vmem [shape: f32[1,128], index: 6, kind: input, shape index: {}]   ;;  %s1101_s7 = inlined_call_operand.vmem [shape: f32[2,8,128], index: 7, kind: output, shape index: {}]  }
   0x1 LB: > { %s224_s27 = sshll.u32 %s1099_s5, 4  ;;  %s990_s28 = sadd.s32 4294967295, %s936_s24   ;;  %s936_s24 = sphi %s981_s24, %s18_s24   ;;  %s225_s27 = int_to_ptr.hbm [resolvable:$true] %s224_s27 }
   0x2   : > { %p699_p0 = scmp.ge.s32.totalorder %s936_s24, 1  ;;  %p201_p1 = scmp.lt.s32.totalorder %s936_s24, 3 }
   0x3   : > { %p878_p2 = scmp.eq.s32.totalorder %s990_s28, 0  ;;  %s938_s29 = smov [#allocation2]  }
   0x4   : > { %p202_p3 = pnand %p699_p0, %p201_p1  ;;  %s226_s30 = sshll.u32 %s938_s29, 4  ;;  %s227_s30 = int_to_ptr.vmem [resolvable:$true] %s226_s30 }
   0x5   : > { %s939_s8 = smov 64   ;;  %s940_s9 = smov 4  }
   0x6   : > { %p874_p4 = pneg %p202_p3  ;;  %253 = sbr.rel (%p202_p3) target bundleno = 460 (0x1cc), region = 48 }
   0x8   : > { %p875_p5 = pnand %p878_p2, %p874_p4 }
   0xa   : > { %877 = dma.hbm_to_vmem [thread:$0]  (!%p875_p5), %s225_s27, 1024, %s227_s30, [#allocation3], %s939_s8, %s939_s8, %s940_s9  }
   0xb   : > { %931 = dma.done.wait (%p878_p2), [#allocation3], 1024  }
   0xc   : > { %933 = vsyncadd (%p878_p2), [#allocation3], 4294966272  ;;  %v845_v0 = vld [vmem:[%s1095_s1 + $0x38] sm:$0xff]  ;;  %v844_v2 = vld [vmem:[%s1095_s1 + $0x30] sm:$0xff]  ;;  %p285_p6 = scmp.lt.s32.totalorder %s990_s28, 1 }
   0xd   : > { %v853_v1 = vld [vmem:[%s1095_s1 + $0x78] sm:$0xff]  ;;  %434 = vmatpush.bf16.msra.mxu0 %v845_v0  ;;  %v852_v3 = vld [vmem:[%s1095_s1 + $0x70] sm:$0xff]  ;;  %v843_v5 = vld [vmem:[%s1095_s1 + $0x28] sm:$0xff] }
   0xe   : > { %447 = vmatpush.bf16.msra.mxu1 %v853_v1  ;;  %v861_v4 = vld [vmem:[%s1097_s3 + $0x38] sm:$0xff]  ;;  %v851_v6 = vld [vmem:[%s1095_s1 + $0x68] sm:$0xff]  ;;  %v860_v7 = vld [vmem:[%s1097_s3 + $0x30] sm:$0xff]  ;;  %s1103_s28 = smov (!%p285_p6, %s990_s28), 1 }
   0xf   : > { %532 = vmatpush.bf16.msra.mxu2 %v861_v4  ;;  %v842_v8 = vld [vmem:[%s1095_s1 + $0x20] sm:$0xff]  ;;  %v859_v10 = vld [vmem:[%s1097_s3 + $0x28] sm:$0xff]  ;;  %v841_v11 = vld [vmem:[%s1095_s1 + $0x18] sm:$0xff]  ;;  %s837_s17 = sshll.u32 %s1103_s28, 3 }
  0x10   : > { %v850_v9 = vld [vmem:[%s1095_s1 + $0x60] sm:$0xff]  ;;  %v849_v12 = vld [vmem:[%s1095_s1 + $0x58] sm:$0xff]  ;;  %v840_v14 = vld [vmem:[%s1095_s1 + $0x10] sm:$0xff]  ;;  %s289_s25 = scalar_lea.vmem %s1094_s0, %s837_s17  ;;  %s293_s8 = scalar_lea.vmem %s1101_s7, %s837_s17 }
  0x11   : > { %435 = vmatpush.bf16.msra.mxu0 %v844_v2  ;;  %v858_v13 = vld [vmem:[%s1097_s3 + $0x20] sm:$0xff]  ;;  %v848_v15 = vld [vmem:[%s1095_s1 + $0x50] sm:$0xff]  ;;  %v857_v16 = vld [vmem:[%s1097_s3 + $0x18] sm:$0xff] }
  0x12   : > { %448 = vmatpush.bf16.msra.mxu1 %v852_v3  ;;  %v839_v17 = vld [vmem:[%s1095_s1 + $0x8] sm:$0xff]  ;;  %v294_v19 = vld [vmem:[%s289_s25] sm:$0xff]  ;;  %v856_v20 = vld [vmem:[%s1097_s3 + $0x10] sm:$0xff] }
  0x13   : > { %533 = vmatpush.bf16.msra.mxu2 %v860_v7  ;;  %v847_v18 = vld [vmem:[%s1095_s1 + $0x48] sm:$0xff]  ;;  %v332_v21 = vunpack.c.l.b16 %v294_v19  ;;  %v333_v22 = vunpack.c.h.b16 %v294_v19  ;;  %v838_v23 = vld [vmem:[%s1095_s1] sm:$0xff]  ;;  %v868_v30 = vld [vmem:[#allocation2 + $0x30] sm:$0xff] }
  0x14   : > { %v846_v24 = vld [vmem:[%s1095_s1 + $0x40] sm:$0xff]  ;;  %v855_v27 = vld [vmem:[%s1097_s3 + $0x8] sm:$0xff]  ;;  %v867_v31 = vld [vmem:[#allocation2 + $0x28] sm:$0xff] }
  0x15   : > { %436 = vmatpush.bf16.msra.mxu0 %v843_v5  ;;  %v334_v25 = vpack.c.b16 %v332_v21, %v332_v21  ;;  %v335_v26 = vpack.c.b16 %v333_v22, %v333_v22  ;;  %v854_v28 = vld [vmem:[%s1097_s3] sm:$0xff]  ;;  %v866_v32 = vld [vmem:[#allocation2 + $0x20] sm:$0xff]  ;;  %v864_v34 = vld [vmem:[#allocation2 + $0x10] sm:$0xff] }
  0x16   : > { %449 = vmatpush.bf16.msra.mxu1 %v851_v6  ;;  %v869_v29 = vld [vmem:[#allocation2 + $0x38] sm:$0xff]  ;;  %v863_v45 = vld [vmem:[#allocation2 + $0x8] sm:$0xff]  ;;  %v862_v46 = vld [vmem:[#allocation2] sm:$0xff] }
  0x17   : > { %534 = vmatpush.bf16.msra.mxu2 %v859_v10  ;;  %617 = vmatpush.bf16.msra.mxu3 %v869_v29  ;;  %v865_v33 = vld [vmem:[#allocation2 + $0x18] sm:$0xff] }
  0x18   : > { %v891_v35 = vld [vmem:[%s1096_s2] ss:$0 sm:$0xff] }
  0x19   : > { %437 = vmatpush.bf16.msra.mxu0 %v842_v8  ;;  %v892_v47 = vld [vmem:[%s1098_s4] ss:$0 sm:$0xff] }
  0x1a   : > { %450 = vmatpush.bf16.msra.mxu1 %v850_v9  ;;  %v893_v54 = vld [vmem:[%s1100_s6] ss:$0 sm:$0xff] }
  0x1b   : > { %535 = vmatpush.bf16.msra.mxu2 %v858_v13  ;;  %618 = vmatpush.bf16.msra.mxu3 %v868_v30 }
  0x1d   : > { %438 = vmatpush.bf16.msra.mxu0 %v841_v11 }
  0x1e   : > { %451 = vmatpush.bf16.msra.mxu1 %v849_v12 }
  0x1f   : > { %536 = vmatpush.bf16.msra.mxu2 %v857_v16  ;;  %619 = vmatpush.bf16.msra.mxu3 %v867_v31 }
  0x21   : > { %439 = vmatpush.bf16.msra.mxu0 %v840_v14 }
  0x22   : > { %452 = vmatpush.bf16.msra.mxu1 %v848_v15 }
  0x23   : > { %537 = vmatpush.bf16.msra.mxu2 %v856_v20  ;;  %620 = vmatpush.bf16.msra.mxu3 %v866_v32 }
  0x25   : > { %440 = vmatpush.bf16.msra.mxu0 %v839_v17 }
  0x26   : > { %453 = vmatpush.bf16.msra.mxu1 %v847_v18 }
  0x27   : > { %538 = vmatpush.bf16.msra.mxu2 %v855_v27  ;;  %621 = vmatpush.bf16.msra.mxu3 %v865_v33 }
  0x29   : > { %441 = vmatpush.bf16.msra.mxu0 %v838_v23 }
  0x2a   : > { %454 = vmatpush.bf16.msra.mxu1 %v846_v24 }
  0x2b   : > { %539 = vmatpush.bf16.msra.mxu2 %v854_v28  ;;  %622 = vmatpush.bf16.msra.mxu3 %v864_v34 }
  0x2c   : > { %442 = vmatmul.bf16.vlgmr.msra.gmra.mxu0 %v334_v25 }
  0x2d   : > { %455 = vmatmul.bf16.vlgmr.msra.gmra.mxu1 %v335_v26 }
  0x2f   : > { %623 = vmatpush.bf16.msra.mxu3 %v863_v45 }
  0x33   : > { %624 = vmatpush.bf16.msra.mxu3 %v862_v46 }
  0xa9   : > { %v443_v36 = vpop.f32.mrf.mxu0 }
  0xaa   : > { %v456_v37 = vpop.f32.mrf.mxu1  ;;  %v444_v38 = vadd.f32 %v891_v35, %v443_v36 }
  0xac   : > { %v457_v39 = vadd.f32 %v456_v37, %v444_v38 }
  0xae   : > { %v461_v40 = vmul.f32 0.2, %v457_v39  ;;  %vm460_vm0 = vcmp.ge.f32.partialorder %v457_v39, 0.0 }
  0xb0   : > { %v462_v41 = vsel %vm460_vm0, %v457_v39, %v461_v40 }
  0xb1   : > { %v445_v42 = vpop.f32.mrf.mxu0  ;;  %v463_v44 = vpack.c.bf16 %v462_v41, %v462_v41 }
  0xb2   : > { %v458_v43 = vpop.f32.mrf.mxu1 }
  0xb3   : > { %540 = vmatmul.bf16.vlgmr.msra.gmra.mxu2 %v463_v44 }
 0x136   : > { %v541_v48 = vpop.f32.mrf.mxu2 }
 0x137   : > { %v542_v49 = vadd.f32 %v892_v47, %v541_v48 }
 0x139   : > { %v546_v50 = vmul.f32 0.2, %v542_v49  ;;  %vm545_vm1 = vcmp.ge.f32.partialorder %v542_v49, 0.0 }
 0x13b   : > { %v547_v51 = vsel %vm545_vm1, %v542_v49, %v546_v50 }
 0x13c   : > { %v548_v52 = vpack.c.bf16 %v547_v51, %v547_v51 }
 0x13e   : > { %v543_v53 = vpop.f32.mrf.mxu2  ;;  %625 = vmatmul.bf16.vlgmr.msra.gmra.mxu3 %v548_v52 }
 0x1c1   : > { %v626_v55 = vpop.f32.mrf.mxu3 }
 0x1c2   : > { %v627_v56 = vadd.f32 %v893_v54, %v626_v55 }
 0x1c4   : > { %894 = vtanh.f32 %v627_v56 }
 0x1c9   : > { %v628_v57 = vpop.f32.mrf.mxu3 }
 0x1ca   : > { %v895_v58 = vpop.eup %894 }
 0x1cb   : > { %631 = vst [vmem:[%s293_s8] sm:$0xff] %v895_v58 }
 0x1cc PF: > { %s18_s24 = sadd.s32 1, %s936_s24  }
 0x1cd   : > { %p15_p7 = scmp.ge.s32.totalorder %s18_s24, 4  }
 0x1cf   :  { %17 = sbr.rel (!%p15_p7) target bundleno = 1 (0x1), region = 83 }
 0x1d4   :  { %651 = vsyncpa [#allocation3], 1 }
 0x1d5   :  { %653 = vsyncpa [#allocation3 + $0x1], 1 }

// kernel: set_ops_forward.7
= control target key start
LH: loop header
LB: loop body
LE: loop exit
PB: predicated region body
PF: predicated region fallthrough
CT: control target
= control target key end

     0   :  { %12 = vsyncpa [#allocation3], 0  ;;  %s1188_s0 = inlined_call_operand.vmem [shape: bf16[2,8,256], index: 0, kind: input, shape index: {}]   ;;  %s1189_s1 = inlined_call_operand.hbm [shape: bf16[256,128], index: 1, kind: input, shape index: {}]   ;;  %s1190_s2 = inlined_call_operand.vmem [shape: f32[1,128], index: 2, kind: input, shape index: {}]   ;;  %s1191_s3 = inlined_call_operand.hbm [shape: bf16[128,128], index: 3, kind: input, shape index: {}]   ;;  %s1192_s4 = inlined_call_operand.vmem [shape: f32[1,128], index: 4, kind: input, shape index: {}]   ;;  %s1193_s5 = inlined_call_operand.hbm [shape: bf16[128,128], index: 5, kind: input, shape index: {}]   ;;  %s1194_s6 = inlined_call_operand.vmem [shape: f32[1,128], index: 6, kind: input, shape index: {}]   ;;  %s1195_s7 = inlined_call_operand.vmem [shape: f32[2,8,128], index: 7, kind: output, shape index: {}]  }
   0x1   :  { %13 = vsyncpa [#allocation5], 0  ;;  %s1123_s24 = smov 0  }
   0x2 LB: > { %s1129_s25 = sadd.s32 4294967295, %s1076_s24   ;;  %p751_p0 = scmp.ge.s32.totalorder %s1076_s24, 1  ;;  %s1076_s24 = sphi %s1123_s24, %s19_s24  }
   0x3   : > { %p202_p1 = scmp.lt.s32.totalorder %s1076_s24, 3  ;;  %p948_p2 = scmp.eq.s32.totalorder %s1129_s25, 0 }
   0x4   : > { %s230_s28 = sshll.u32 %s1191_s3, 4  ;;  %s213_s9 = sshll.u32 %s1189_s1, 4  ;;  %s231_s28 = int_to_ptr.hbm [resolvable:$true] %s230_s28  ;;  %s214_s9 = int_to_ptr.hbm [resolvable:$true] %s213_s9 }
   0x5   : > { %p1137_p3 = pnand %p751_p0, %p202_p1  ;;  %s1078_s10 = smov [#allocation4]  }
   0x6   : > { %s232_s11 = sshll.u32 %s1078_s10, 4  ;;  %s1079_s12 = smov [#allocation2]   ;;  %s233_s11 = int_to_ptr.vmem [resolvable:$true] %s232_s11 }
   0x7   : > { %p938_p4 = pneg %p1137_p3  ;;  %s215_s13 = sshll.u32 %s1079_s12, 4  ;;  %s216_s13 = int_to_ptr.vmem [resolvable:$true] %s215_s13 }
   0x8   : > { %s247_s16 = sshll.u32 %s1193_s5, 4  ;;  %s1080_s17 = smov 64   ;;  %s248_s16 = int_to_ptr.hbm [resolvable:$true] %s247_s16 }
   0x9   : > { %p939_p5 = pnand %p948_p2, %p938_p4  ;;  %s1081_s18 = smov 4  }
   0xa   : > { %s1082_s19 = smov [#allocation6]   ;;  %276 = sbr.rel (%p1137_p3) target bundleno = 466 (0x1d2), region = 48 }
   0xb   : > { %944 = dma.hbm_to_vmem [thread:$0]  (!%p939_p5), %s231_s28, 1024, %s233_s11, [#allocation5], %s1080_s17, %s1080_s17, %s1081_s18  }
   0xc   : > { %941 = dma.hbm_to_vmem [thread:$0]  (!%p939_p5), %s214_s9, 2048, %s216_s13, [#allocation3], %s1080_s17, %s1080_s17, %s1081_s18  }
   0xd   : > { %s249_s20 = sshll.u32 %s1082_s19, 4  ;;  %s250_s20 = int_to_ptr.vmem [resolvable:$true] %s249_s20 }
   0xe   : > { %947 = dma.hbm_to_vmem [thread:$0]  (!%p939_p5), %s248_s16, 1024, %s250_s20, [#allocation5], %s1080_s17, %s1080_s17, %s1081_s18  }
   0xf   : > { %1067 = dma.done.wait (%p948_p2), [#allocation3], 2048  }
  0x10   : > { %1069 = vsyncadd (%p948_p2), [#allocation3], 4294965248 }
  0x11   : > { %1071 = dma.done.wait (%p948_p2), [#allocation5], 2048  }
  0x12   : > { %1073 = vsyncadd (%p948_p2), [#allocation5], 4294965248  ;;  %v901_v0 = vld [vmem:[#allocation2 + $0x38] sm:$0xff]  ;;  %v900_v2 = vld [vmem:[#allocation2 + $0x30] sm:$0xff]  ;;  %p318_p6 = scmp.lt.s32.totalorder %s1129_s25, 1 }
  0x13   : > { %v909_v1 = vld [vmem:[#allocation2 + $0x78] sm:$0xff]  ;;  %467 = vmatpush.bf16.msra.mxu0 %v901_v0  ;;  %v908_v3 = vld [vmem:[#allocation2 + $0x70] sm:$0xff]  ;;  %v899_v5 = vld [vmem:[#allocation2 + $0x28] sm:$0xff] }
  0x14   : > { %480 = vmatpush.bf16.msra.mxu1 %v909_v1  ;;  %v917_v4 = vld [vmem:[#allocation4 + $0x38] sm:$0xff]  ;;  %v907_v6 = vld [vmem:[#allocation2 + $0x68] sm:$0xff]  ;;  %v916_v7 = vld [vmem:[#allocation4 + $0x30] sm:$0xff]  ;;  %s1198_s25 = smov (!%p318_p6, %s1129_s25), 1 }
  0x15   : > { %565 = vmatpush.bf16.msra.mxu2 %v917_v4  ;;  %v898_v8 = vld [vmem:[#allocation2 + $0x20] sm:$0xff]  ;;  %v915_v10 = vld [vmem:[#allocation4 + $0x28] sm:$0xff]  ;;  %v897_v11 = vld [vmem:[#allocation2 + $0x18] sm:$0xff]  ;;  %s893_s21 = sshll.u32 %s1198_s25, 3 }
  0x16   : > { %v906_v9 = vld [vmem:[#allocation2 + $0x60] sm:$0xff]  ;;  %v905_v12 = vld [vmem:[#allocation2 + $0x58] sm:$0xff]  ;;  %v896_v14 = vld [vmem:[#allocation2 + $0x10] sm:$0xff]  ;;  %s322_s26 = scalar_lea.vmem %s1188_s0, %s893_s21  ;;  %s326_s12 = scalar_lea.vmem %s1195_s7, %s893_s21 }
  0x17   : > { %468 = vmatpush.bf16.msra.mxu0 %v900_v2  ;;  %v914_v13 = vld [vmem:[#allocation4 + $0x20] sm:$0xff]  ;;  %v904_v15 = vld [vmem:[#allocation2 + $0x50] sm:$0xff]  ;;  %v913_v16 = vld [vmem:[#allocation4 + $0x18] sm:$0xff] }
  0x18   : > { %481 = vmatpush.bf16.msra.mxu1 %v908_v3  ;;  %v895_v17 = vld [vmem:[#allocation2 + $0x8] sm:$0xff]  ;;  %v327_v19 = vld [vmem:[%s322_s26] sm:$0xff]  ;;  %v912_v20 = vld [vmem:[#allocation4 + $0x10] sm:$0xff] }
  0x19   : > { %566 = vmatpush.bf16.msra.mxu2 %v916_v7  ;;  %v903_v18 = vld [vmem:[#allocation2 + $0x48] sm:$0xff]  ;;  %v365_v21 = vunpack.c.l.b16 %v327_v19  ;;  %v366_v22 = vunpack.c.h.b16 %v327_v19  ;;  %v894_v23 = vld [vmem:[#allocation2] sm:$0xff]  ;;  %v925_v29 = vld [vmem:[#allocation6 + $0x38] sm:$0xff] }
  0x1a   : > { %v902_v24 = vld [vmem:[#allocation2 + $0x40] sm:$0xff]  ;;  %v911_v27 = vld [vmem:[#allocation4 + $0x8] sm:$0xff]  ;;  %650 = vmatpush.bf16.msra.mxu3 %v925_v29  ;;  %v924_v30 = vld [vmem:[#allocation6 + $0x30] sm:$0xff] }
  0x1b   : > { %469 = vmatpush.bf16.msra.mxu0 %v899_v5  ;;  %v367_v25 = vpack.c.b16 %v365_v21, %v365_v21  ;;  %v368_v26 = vpack.c.b16 %v366_v22, %v366_v22  ;;  %v910_v28 = vld [vmem:[#allocation4] sm:$0xff]  ;;  %v923_v31 = vld [vmem:[#allocation6 + $0x28] sm:$0xff]  ;;  %v921_v33 = vld [vmem:[#allocation6 + $0x18] sm:$0xff] }
  0x1c   : > { %482 = vmatpush.bf16.msra.mxu1 %v907_v6  ;;  %v922_v32 = vld [vmem:[#allocation6 + $0x20] sm:$0xff]  ;;  %v920_v34 = vld [vmem:[#allocation6 + $0x10] sm:$0xff]  ;;  %v967_v35 = vld [vmem:[%s1190_s2] ss:$0 sm:$0xff] }
  0x1d   : > { %567 = vmatpush.bf16.msra.mxu2 %v915_v10  ;;  %v919_v45 = vld [vmem:[#allocation6 + $0x8] sm:$0xff]  ;;  %v918_v46 = vld [vmem:[#allocation6] sm:$0xff]  ;;  %v968_v47 = vld [vmem:[%s1192_s4] ss:$0 sm:$0xff] }
  0x1e   : > { %651 = vmatpush.bf16.msra.mxu3 %v924_v30  ;;  %v969_v54 = vld [vmem:[%s1194_s6] ss:$0 sm:$0xff] }
  0x1f   : > { %470 = vmatpush.bf16.msra.mxu0 %v898_v8 }
  0x20   : > { %483 = vmatpush.bf16.msra.mxu1 %v906_v9 }
  0x21   : > { %568 = vmatpush.bf16.msra.mxu2 %v914_v13 }
  0x22   : > { %652 = vmatpush.bf16.msra.mxu3 %v923_v31 }
  0x23   : > { %471 = vmatpush.bf16.msra.mxu0 %v897_v11 }
  0x24   : > { %484 = vmatpush.bf16.msra.mxu1 %v905_v12 }
  0x25   : > { %569 = vmatpush.bf16.msra.mxu2 %v913_v16 }
  0x26   : > { %653 = vmatpush.bf16.msra.mxu3 %v922_v32 }
  0x27   : > { %472 = vmatpush.bf16.msra.mxu0 %v896_v14 }
  0x28   : > { %485 = vmatpush.bf16.msra.mxu1 %v904_v15 }
  0x29   : > { %570 = vmatpush.bf16.msra.mxu2 %v912_v20 }
  0x2a   : > { %654 = vmatpush.bf16.msra.mxu3 %v921_v33 }
  0x2b   : > { %473 = vmatpush.bf16.msra.mxu0 %v895_v17 }
  0x2c   : > { %486 = vmatpush.bf16.msra.mxu1 %v903_v18 }
  0x2d   : > { %571 = vmatpush.bf16.msra.mxu2 %v911_v27 }
  0x2e   : > { %655 = vmatpush.bf16.msra.mxu3 %v920_v34 }
  0x2f   : > { %474 = vmatpush.bf16.msra.mxu0 %v894_v23 }
  0x30   : > { %487 = vmatpush.bf16.msra.mxu1 %v902_v24 }
  0x31   : > { %572 = vmatpush.bf16.msra.mxu2 %v910_v28 }
  0x32   : > { %475 = vmatmul.bf16.vlgmr.msra.gmra.mxu0 %v367_v25  ;;  %656 = vmatpush.bf16.msra.mxu3 %v919_v45 }
  0x33   : > { %488 = vmatmul.bf16.vlgmr.msra.gmra.mxu1 %v368_v26 }
  0x36   : > { %657 = vmatpush.bf16.msra.mxu3 %v918_v46 }
  0xaf   : > { %v476_v36 = vpop.f32.mrf.mxu0 }
  0xb0   : > { %v489_v37 = vpop.f32.mrf.mxu1  ;;  %v477_v38 = vadd.f32 %v967_v35, %v476_v36 }
  0xb2   : > { %v490_v39 = vadd.f32 %v489_v37, %v477_v38 }
  0xb4   : > { %v494_v40 = vmul.f32 0.2, %v490_v39  ;;  %vm493_vm0 = vcmp.ge.f32.partialorder %v490_v39, 0.0 }
  0xb6   : > { %v495_v41 = vsel %vm493_vm0, %v490_v39, %v494_v40 }
  0xb7   : > { %v478_v42 = vpop.f32.mrf.mxu0  ;;  %v496_v44 = vpack.c.bf16 %v495_v41, %v495_v41 }
  0xb8   : > { %v491_v43 = vpop.f32.mrf.mxu1 }
  0xb9   : > { %573 = vmatmul.bf16.vlgmr.msra.gmra.mxu2 %v496_v44 }
 0x13c   : > { %v574_v48 = vpop.f32.mrf.mxu2 }
 0x13d   : > { %v575_v49 = vadd.f32 %v968_v47, %v574_v48 }
 0x13f   : > { %v579_v50 = vmul.f32 0.2, %v575_v49  ;;  %vm578_vm1 = vcmp.ge.f32.partialorder %v575_v49, 0.0 }
 0x141   : > { %v580_v51 = vsel %vm578_vm1, %v575_v49, %v579_v50 }
 0x142   : > { %v581_v52 = vpack.c.bf16 %v580_v51, %v580_v51 }
 0x144   : > { %v576_v53 = vpop.f32.mrf.mxu2  ;;  %658 = vmatmul.bf16.vlgmr.msra.gmra.mxu3 %v581_v52 }
 0x1c7   : > { %v659_v55 = vpop.f32.mrf.mxu3 }
 0x1c8   : > { %v660_v56 = vadd.f32 %v969_v54, %v659_v55 }
 0x1ca   : > { %970 = vtanh.f32 %v660_v56 }
 0x1cf   : > { %v661_v57 = vpop.f32.mrf.mxu3 }
 0x1d0   : > { %v971_v58 = vpop.eup %970 }
 0x1d1   : > { %664 = vst [vmem:[%s326_s12] sm:$0xff] %v971_v58 }
 0x1d2 PF: > { %s19_s24 = sadd.s32 1, %s1076_s24  }
 0x1d3   : > { %p16_p7 = scmp.ge.s32.totalorder %s19_s24, 4  }
 0x1d5   :  { %18 = sbr.rel (!%p16_p7) target bundleno = 2 (0x2), region = 91 }
 0x1da   :  { %684 = vsyncpa [#allocation3], 1 }
 0x1db   :  { %686 = vsyncpa [#allocation3 + $0x1], 1 }
 0x1dc   :  { %687 = vsyncpa [#allocation5], 1 }

// kernel: set_ops_forward.11
= control target key start
LH: loop header
LB: loop body
LE: loop exit
PB: predicated region body
PF: predicated region fallthrough
CT: control target
= control target key end

     0   :  { %12 = vsyncpa [#allocation3], 0  ;;  %s1165_s0 = inlined_call_operand.vmem [shape: bf16[4,8,256], index: 0, kind: input, shape index: {}]   ;;  %s1166_s1 = inlined_call_operand.vmem [shape: bf16[256,128], index: 1, kind: input, shape index: {}]   ;;  %s1167_s2 = inlined_call_operand.vmem [shape: f32[1,128], index: 2, kind: input, shape index: {}]   ;;  %s1168_s3 = inlined_call_operand.hbm [shape: bf16[128,128], index: 3, kind: input, shape index: {}]   ;;  %s1169_s4 = inlined_call_operand.vmem [shape: f32[1,128], index: 4, kind: input, shape index: {}]   ;;  %s1170_s5 = inlined_call_operand.hbm [shape: bf16[128,128], index: 5, kind: input, shape index: {}]   ;;  %s1171_s6 = inlined_call_operand.vmem [shape: f32[1,128], index: 6, kind: input, shape index: {}]   ;;  %s1172_s7 = inlined_call_operand.vmem [shape: f32[4,8,128], index: 7, kind: output, shape index: {}]  }
   0x1   :  { %13 = vsyncpa [#allocation5], 0  ;;  %s1055_s24 = smov 0  }
   0x2 LB: > { %s219_s27 = sshll.u32 %s1168_s3, 4  ;;  %s1064_s28 = sadd.s32 4294967295, %s1009_s24   ;;  %s1009_s24 = sphi %s1055_s24, %s19_s24   ;;  %s220_s27 = int_to_ptr.hbm [resolvable:$true] %s219_s27 }
   0x3   : > { %p726_p0 = scmp.ge.s32.totalorder %s1009_s24, 1  ;;  %p202_p1 = scmp.lt.s32.totalorder %s1009_s24, 5 }
   0x4   : > { %p914_p2 = scmp.eq.s32.totalorder %s1064_s28, 0  ;;  %s1011_s30 = smov [#allocation2]  }
   0x5   : > { %p1069_p3 = pnand %p726_p0, %p202_p1  ;;  %s221_s8 = sshll.u32 %s1011_s30, 4  ;;  %s222_s8 = int_to_ptr.vmem [resolvable:$true] %s221_s8 }
   0x6   : > { %s236_s11 = sshll.u32 %s1170_s5, 4  ;;  %s1012_s12 = smov [#allocation4]   ;;  %s237_s11 = int_to_ptr.hbm [resolvable:$true] %s236_s11 }
   0x7   : > { %p907_p4 = pneg %p1069_p3  ;;  %s238_s13 = sshll.u32 %s1012_s12, 4  ;;  %s239_s13 = int_to_ptr.vmem [resolvable:$true] %s238_s13 }
   0x8   : > { %s1013_s14 = smov 64   ;;  %s1014_s15 = smov 4  }
   0x9   : > { %p908_p5 = pnand %p914_p2, %p907_p4  ;;  %265 = sbr.rel (%p1069_p3) target bundleno = 465 (0x1d1), region = 48 }
   0xb   : > { %910 = dma.hbm_to_vmem [thread:$0]  (!%p908_p5), %s220_s27, 1024, %s222_s8, [#allocation3], %s1013_s14, %s1013_s14, %s1014_s15  }
   0xc   : > { %913 = dma.hbm_to_vmem [thread:$0]  (!%p908_p5), %s237_s11, 1024, %s239_s13, [#allocation5], %s1013_s14, %s1013_s14, %s1014_s15  }
   0xe   : > { %1000 = dma.done.wait (%p914_p2), [#allocation3], 1024  }
   0xf   : > { %1002 = vsyncadd (%p914_p2), [#allocation3], 4294966272 }
  0x10   : > { %1004 = dma.done.wait (%p914_p2), [#allocation5], 1024  }
  0x11   : > { %1006 = vsyncadd (%p914_p2), [#allocation5], 4294966272  ;;  %v874_v0 = vld [vmem:[%s1166_s1 + $0x38] sm:$0xff]  ;;  %v873_v2 = vld [vmem:[%s1166_s1 + $0x30] sm:$0xff]  ;;  %p302_p6 = scmp.lt.s32.totalorder %s1064_s28, 3 }
  0x12   : > { %v882_v1 = vld [vmem:[%s1166_s1 + $0x78] sm:$0xff]  ;;  %451 = vmatpush.bf16.msra.mxu0 %v874_v0  ;;  %v881_v3 = vld [vmem:[%s1166_s1 + $0x70] sm:$0xff]  ;;  %v890_v4 = vld [vmem:[#allocation2 + $0x38] sm:$0xff] }
  0x13   : > { %464 = vmatpush.bf16.msra.mxu1 %v882_v1  ;;  %v872_v5 = vld [vmem:[%s1166_s1 + $0x28] sm:$0xff]  ;;  %549 = vmatpush.bf16.msra.mxu2 %v890_v4  ;;  %v889_v7 = vld [vmem:[#allocation2 + $0x30] sm:$0xff]  ;;  %v871_v8 = vld [vmem:[%s1166_s1 + $0x20] sm:$0xff]  ;;  %s1175_s28 = smov (!%p302_p6, %s1064_s28), 3 }
  0x14   : > { %v880_v6 = vld [vmem:[%s1166_s1 + $0x68] sm:$0xff]  ;;  %v879_v9 = vld [vmem:[%s1166_s1 + $0x60] sm:$0xff]  ;;  %v888_v10 = vld [vmem:[#allocation2 + $0x28] sm:$0xff]  ;;  %s866_s15 = sshll.u32 %s1175_s28, 3 }
  0x15   : > { %v870_v11 = vld [vmem:[%s1166_s1 + $0x18] sm:$0xff]  ;;  %v887_v13 = vld [vmem:[#allocation2 + $0x20] sm:$0xff]  ;;  %v869_v14 = vld [vmem:[%s1166_s1 + $0x10] sm:$0xff]  ;;  %s306_s22 = scalar_lea.vmem %s1165_s0, %s866_s15  ;;  %s310_s19 = scalar_lea.vmem %s1172_s7, %s866_s15 }
  0x16   : > { %452 = vmatpush.bf16.msra.mxu0 %v873_v2  ;;  %v878_v12 = vld [vmem:[%s1166_s1 + $0x58] sm:$0xff]  ;;  %v877_v15 = vld [vmem:[%s1166_s1 + $0x50] sm:$0xff]  ;;  %v886_v16 = vld [vmem:[#allocation2 + $0x18] sm:$0xff] }
  0x17   : > { %465 = vmatpush.bf16.msra.mxu1 %v881_v3  ;;  %550 = vmatpush.bf16.msra.mxu2 %v889_v7  ;;  %v868_v17 = vld [vmem:[%s1166_s1 + $0x8] sm:$0xff]  ;;  %v311_v19 = vld [vmem:[%s306_s22] sm:$0xff]  ;;  %v885_v20 = vld [vmem:[#allocation2 + $0x10] sm:$0xff] }
  0x18   : > { %v876_v18 = vld [vmem:[%s1166_s1 + $0x48] sm:$0xff]  ;;  %v349_v21 = vunpack.c.l.b16 %v311_v19  ;;  %v350_v22 = vunpack.c.h.b16 %v311_v19  ;;  %v867_v23 = vld [vmem:[%s1166_s1] sm:$0xff]  ;;  %v884_v27 = vld [vmem:[#allocation2 + $0x8] sm:$0xff] }
  0x19   : > { %v875_v24 = vld [vmem:[%s1166_s1 + $0x40] sm:$0xff]  ;;  %v883_v28 = vld [vmem:[#allocation2] sm:$0xff]  ;;  %v897_v30 = vld [vmem:[#allocation4 + $0x30] sm:$0xff] }
  0x1a   : > { %453 = vmatpush.bf16.msra.mxu0 %v872_v5  ;;  %v351_v25 = vpack.c.b16 %v349_v21, %v349_v21  ;;  %v352_v26 = vpack.c.b16 %v350_v22, %v350_v22  ;;  %v898_v29 = vld [vmem:[#allocation4 + $0x38] sm:$0xff]  ;;  %v896_v31 = vld [vmem:[#allocation4 + $0x28] sm:$0xff]  ;;  %v895_v32 = vld [vmem:[#allocation4 + $0x20] sm:$0xff] }
  0x1b   : > { %466 = vmatpush.bf16.msra.mxu1 %v880_v6  ;;  %551 = vmatpush.bf16.msra.mxu2 %v888_v10  ;;  %v894_v33 = vld [vmem:[#allocation4 + $0x18] sm:$0xff]  ;;  %v893_v34 = vld [vmem:[#allocation4 + $0x10] sm:$0xff]  ;;  %v892_v45 = vld [vmem:[#allocation4 + $0x8] sm:$0xff] }
  0x1c   : > { %634 = vmatpush.bf16.msra.mxu3 %v898_v29  ;;  %v930_v35 = vld [vmem:[%s1167_s2] ss:$0 sm:$0xff]  ;;  %v891_v46 = vld [vmem:[#allocation4] sm:$0xff] }
  0x1d   : > { %v931_v47 = vld [vmem:[%s1169_s4] ss:$0 sm:$0xff] }
  0x1e   : > { %454 = vmatpush.bf16.msra.mxu0 %v871_v8  ;;  %v932_v54 = vld [vmem:[%s1171_s6] ss:$0 sm:$0xff] }
  0x1f   : > { %467 = vmatpush.bf16.msra.mxu1 %v879_v9  ;;  %552 = vmatpush.bf16.msra.mxu2 %v887_v13 }
  0x20   : > { %635 = vmatpush.bf16.msra.mxu3 %v897_v30 }
  0x22   : > { %455 = vmatpush.bf16.msra.mxu0 %v870_v11 }
  0x23   : > { %468 = vmatpush.bf16.msra.mxu1 %v878_v12  ;;  %553 = vmatpush.bf16.msra.mxu2 %v886_v16 }
  0x24   : > { %636 = vmatpush.bf16.msra.mxu3 %v896_v31 }
  0x26   : > { %456 = vmatpush.bf16.msra.mxu0 %v869_v14 }
  0x27   : > { %469 = vmatpush.bf16.msra.mxu1 %v877_v15  ;;  %554 = vmatpush.bf16.msra.mxu2 %v885_v20 }
  0x28   : > { %637 = vmatpush.bf16.msra.mxu3 %v895_v32 }
  0x2a   : > { %457 = vmatpush.bf16.msra.mxu0 %v868_v17 }
  0x2b   : > { %470 = vmatpush.bf16.msra.mxu1 %v876_v18  ;;  %555 = vmatpush.bf16.msra.mxu2 %v884_v27 }
  0x2c   : > { %638 = vmatpush.bf16.msra.mxu3 %v894_v33 }
  0x2e   : > { %458 = vmatpush.bf16.msra.mxu0 %v867_v23 }
  0x2f   : > { %471 = vmatpush.bf16.msra.mxu1 %v875_v24  ;;  %556 = vmatpush.bf16.msra.mxu2 %v883_v28 }
  0x30   : > { %639 = vmatpush.bf16.msra.mxu3 %v893_v34 }
  0x31   : > { %459 = vmatmul.bf16.vlgmr.msra.gmra.mxu0 %v351_v25 }
  0x32   : > { %472 = vmatmul.bf16.vlgmr.msra.gmra.mxu1 %v352_v26 }
  0x34   : > { %640 = vmatpush.bf16.msra.mxu3 %v892_v45 }
  0x38   : > { %641 = vmatpush.bf16.msra.mxu3 %v891_v46 }
  0xae   : > { %v460_v36 = vpop.f32.mrf.mxu0 }
  0xaf   : > { %v473_v37 = vpop.f32.mrf.mxu1  ;;  %v461_v38 = vadd.f32 %v930_v35, %v460_v36 }
  0xb1   : > { %v474_v39 = vadd.f32 %v473_v37, %v461_v38 }
  0xb3   : > { %v478_v40 = vmul.f32 0.2, %v474_v39  ;;  %vm477_vm0 = vcmp.ge.f32.partialorder %v474_v39, 0.0 }
  0xb5   : > { %v479_v41 = vsel %vm477_vm0, %v474_v39, %v478_v40 }
  0xb6   : > { %v462_v42 = vpop.f32.mrf.mxu0  ;;  %v480_v44 = vpack.c.bf16 %v479_v41, %v479_v41 }
  0xb7   : > { %v475_v43 = vpop.f32.mrf.mxu1 }
  0xb8   : > { %557 = vmatmul.bf16.vlgmr.msra.gmra.mxu2 %v480_v44 }
 0x13b   : > { %v558_v48 = vpop.f32.mrf.mxu2 }
 0x13c   : > { %v559_v49 = vadd.f32 %v931_v47, %v558_v48 }
 0x13e   : > { %v563_v50 = vmul.f32 0.2, %v559_v49  ;;  %vm562_vm1 = vcmp.ge.f32.partialorder %v559_v49, 0.0 }
 0x140   : > { %v564_v51 = vsel %vm562_vm1, %v559_v49, %v563_v50 }
 0x141   : > { %v565_v52 = vpack.c.bf16 %v564_v51, %v564_v51 }
 0x143   : > { %v560_v53 = vpop.f32.mrf.mxu2  ;;  %642 = vmatmul.bf16.vlgmr.msra.gmra.mxu3 %v565_v52 }
 0x1c6   : > { %v643_v55 = vpop.f32.mrf.mxu3 }
 0x1c7   : > { %v644_v56 = vadd.f32 %v932_v54, %v643_v55 }
 0x1c9   : > { %933 = vtanh.f32 %v644_v56 }
 0x1ce   : > { %v645_v57 = vpop.f32.mrf.mxu3 }
 0x1cf   : > { %v934_v58 = vpop.eup %933 }
 0x1d0   : > { %648 = vst [vmem:[%s310_s19] sm:$0xff] %v934_v58 }
 0x1d1 PF: > { %s19_s24 = sadd.s32 1, %s1009_s24  }
 0x1d2   : > { %p16_p7 = scmp.ge.s32.totalorder %s19_s24, 6  }
 0x1d4   :  { %18 = sbr.rel (!%p16_p7) target bundleno = 2 (0x2), region = 87 }
 0x1d9   :  { %668 = vsyncpa [#allocation3], 1 }
 0x1da   :  { %670 = vsyncpa [#allocation3 + $0x1], 1 }
 0x1db   :  { %671 = vsyncpa [#allocation5], 1 }

</bundles_post_ra>
